<compile_context>
chip_gen: v6e
topology: v6e:2x2x1
jax: 0.10.0
libtpu: 0.0.40
codegen_flags: <defaults>
</compile_context>

<pallas_src>
import jax
import jax.numpy as jnp
import numpy as np
from jax.experimental import pallas as pl
from jax.experimental.pallas import tpu as pltpu


def _round_up(x: int, m: int) -> int:
    return ((x + m - 1) // m) * m


# ---------------------------------------------------------------------------
# Kernel
# ---------------------------------------------------------------------------
def _make_kernel(num_hidden: int, h: int):
    """Per-batch-tile forward kernel (num_hidden MLP blocks unrolled statically)."""

    def kernel(x_ref, m1_ref, b1_ref, m2_ref, b2_ref, w3t_ref, b3_ref,
               wn_ref, bn_ref, gn_ref, betan_ref, wout_ref, bout_ref, o_ref):
        # conv1 (kernel (Ls,1)) as a bf16 batched matmul with f32 accumulation.
        z1 = jnp.dot(x_ref[...], m1_ref[...],
                     preferred_element_type=jnp.float32) + b1_ref[...]   # (Bt, 2h*D) f32
        # tanh on the bf16 activation (bf16 EUP on v6e/v7x; widened on v5e).
        h1 = jnp.tanh(z1.astype(jnp.bfloat16))                            # (Bt, 2h*D) bf16

        # conv2 (1x1 conv) as a bf16 batched matmul.
        z2 = jnp.dot(h1, m2_ref[...],
                     preferred_element_type=jnp.float32) + b2_ref[...]    # (Bt, h*D) f32
        h2 = jnp.tanh(z2.astype(jnp.bfloat16))                            # (Bt, h*D) bf16

        # conv_out: Linear over flattened (c, w) features -> single MXU matmul.
        s = jnp.tanh(jnp.dot(h2, w3t_ref[...],
                             preferred_element_type=jnp.float32) + b3_ref[...])  # (Bt, h) f32

        # MLP head: [Linear(h,h), LayerNorm(h), Tanh] * num_hidden, then Linear + Tanh.
        # Small matmuls + all LayerNorm math kept in f32 (accuracy; v5e has no bf16 VPU/EUP).
        for l in range(num_hidden):
            y = jnp.dot(s, wn_ref[l], preferred_element_type=jnp.float32) + bn_ref[l]
            mean = jnp.mean(y, axis=-1, keepdims=True)
            # ERL-style LayerNorm: unbiased std, eps added to the std (not the var).
            var = jnp.sum((y - mean) ** 2, axis=-1, keepdims=True) * (1.0 / (h - 1))
            # (Bt,1) reciprocal + multiply instead of dividing the full (Bt,h) tensor.
            inv = pl.reciprocal(jnp.sqrt(var) + 1e-6, approx=False)
            y = gn_ref[l] * ((y - mean) * inv) + betan_ref[l]
            s = jnp.tanh(y)

        # Output linear; lane-dense because action_dim is padded to 128 columns.
        o_ref[...] = jnp.tanh(
            jnp.dot(s, wout_ref[...], preferred_element_type=jnp.float32) + bout_ref[...]
        )                                                                  # (Bt, Np)

    return kernel


# ---------------------------------------------------------------------------
# Host-side parameter preparation (done once, outside the kernel)
# ---------------------------------------------------------------------------
def prepare_kernel_params(params, state_dim: int):
    """Expand conv weights into lane-dense block-diagonal matmul weights (bf16 MXU operands)."""
    h = params["w2"].shape[0]
    Ls = params["w1"].shape[1]
    D = state_dim
    action_dim = params["wout"].shape[1]
    eye = jnp.eye(D, dtype=jnp.float32)

    # M1[k*D+w, c*D+v] = W1[c, k] * I[w, v]
    m1 = jnp.einsum("ck,wv->kwcv", params["w1"], eye).reshape(Ls * D, 2 * h * D)
    # M2[c*D+w, d*D+v] = W2[d, c] * I[w, v]
    m2 = jnp.einsum("dc,wv->cwdv", params["w2"], eye).reshape(2 * h * D, h * D)
    b1e = jnp.repeat(params["b1"].reshape(-1), D)[None, :]           # (1, 2h*D)
    b2e = jnp.repeat(params["b2"].reshape(-1), D)[None, :]           # (1, h*D)
    w3t = params["w3r"].reshape(h, h * D).T                           # (h*D, h)

    # Lane-dense output: pad action_dim up to a multiple of 128. Zero weight/bias
    # columns give tanh(0)=0; they are sliced off on the host.
    Np = _round_up(action_dim, 128)
    wout_p = jnp.zeros((h, Np), jnp.float32).at[:, :action_dim].set(params["wout"])
    bout_p = jnp.zeros((1, Np), jnp.float32).at[:, :action_dim].set(params["bout"])

    return {
        # Large-matmul operands in bf16 (f32 accumulation happens in-kernel).
        "m1": m1.astype(jnp.bfloat16), "b1e": b1e,
        "m2": m2.astype(jnp.bfloat16), "b2e": b2e,
        "w3t": w3t.astype(jnp.bfloat16), "b3": params["b3"],
        # Small MLP / output matmuls stay f32 (negligible FLOPs, better accuracy).
        "wn": params["wn"], "bn": params["bn"],
        "gn": params["gn"], "betan": params["betan"],
        "wout_p": wout_p, "bout_p": bout_p,
        "num_hidden": int(params["num_hidden"]),
        "h": h, "Ls": Ls, "D": D, "action_dim": action_dim, "Np": Np,
    }


# ---------------------------------------------------------------------------
# Pallas forward
# ---------------------------------------------------------------------------
def conv_actor_forward(kp, state, *, max_batch_tile: int = 1024):
    """state: (B, state_length, state_dim) f32 -> (B, action_dim) f32."""
    if state.ndim == 2:                                   # glue, mirrors the torch module
        state = state[None]
    B, Ls, D = state.shape
    assert (Ls, D) == (kp["Ls"], kp["D"])
    assert max_batch_tile % 8 == 0, "batch tile cap must be a multiple of 8"
    h, Np, action_dim = kp["h"], kp["Np"], kp["action_dim"]
    num_hidden = kp["num_hidden"]
    nh_ = max(num_hidden, 1)
    C1, C2 = 2 * h * D, h * D

    # Flatten (Ls, D) into a lane-dense feature axis; cast to bf16 on the host so
    # the only per-step HBM->VMEM stream moves half the bytes.
    x2 = state.reshape(B, Ls * D).astype(jnp.bfloat16)

    # Batch tiling: always >= 2 grid steps with an EVEN tile count so the "parallel"
    # batch axis shards across both v7x TensorCores (harmless on v5e/v6e).  Bt is a
    # multiple of 8 sublanes and capped by max_batch_tile.
    n_tiles = max(2, -(-B // max_batch_tile))
    if n_tiles % 2:
        n_tiles += 1
    Bt = _round_up(-(-B // n_tiles), 8)
    Bpad = n_tiles * Bt
    if Bpad != B:
        x2 = jnp.pad(x2, ((0, Bpad - B), (0, 0)))

    kernel = _make_kernel(num_hidden, h)

    z2 = lambda i: (0, 0)
    z3 = lambda i: (0, 0, 0)
    in_specs = [
        pl.BlockSpec((Bt, Ls * D), lambda i: (i, 0)),      # state tile (batch rows, lane-dense)
        pl.BlockSpec((Ls * D, C1), z2),                    # conv1 expanded weight (bf16)
        pl.BlockSpec((1, C1), z2),                         # conv1 expanded bias
        pl.BlockSpec((C1, C2), z2),                        # conv2 expanded weight (bf16)
        pl.BlockSpec((1, C2), z2),                         # conv2 expanded bias
        pl.BlockSpec((C2, h), z2),                         # conv_out weight (pre-transposed, bf16)
        pl.BlockSpec((1, h), z2),                          # conv_out bias
        pl.BlockSpec((nh_, h, h), z3),                     # MLP weights (pre-transposed)
        pl.BlockSpec((nh_, 1, h), z3),                     # MLP biases
        pl.BlockSpec((nh_, 1, h), z3),                     # LayerNorm gammas
        pl.BlockSpec((nh_, 1, h), z3),                     # LayerNorm betas
        pl.BlockSpec((h, Np), z2),                         # output weight (padded to 128 lanes)
        pl.BlockSpec((1, Np), z2),                         # output bias (padded)
    ]

    # Advisory cost estimate so the XLA scheduler overlaps the call sensibly.
    flops = 2 * Bpad * (Ls * D * C1 + C1 * C2 + C2 * h + num_hidden * h * h + h * Np)
    transcendentals = Bpad * (C1 + C2 + h + num_hidden * h + Np)
    weight_bytes = sum(int(np.prod(v.shape)) * v.dtype.itemsize
                       for v in kp.values() if hasattr(v, "dtype"))
    bytes_accessed = int(x2.size) * 2 + Bpad * Np * 4 + weight_bytes

    out = pl.pallas_call(
        kernel,
        out_shape=jax.ShapeDtypeStruct((Bpad, Np), jnp.float32),
        grid=(n_tiles,),
        in_specs=in_specs,
        out_specs=pl.BlockSpec((Bt, Np), lambda i: (i, 0)),
        compiler_params=pltpu.CompilerParams(
            dimension_semantics=("parallel",),
            # Covers the larger live set at Bt=1024 (h1/h2 temporaries + buffers);
            # below every generation's physical VMEM (incl. v7x's 64 MiB/TC).
            vmem_limit_bytes=48 * 1024 * 1024,
        ),
        cost_estimate=pl.CostEstimate(flops=flops,
                                      transcendentals=transcendentals,
                                      bytes_accessed=bytes_accessed),
    )(x2, kp["m1"], kp["b1e"], kp["m2"], kp["b2e"], kp["w3t"], kp["b3"],
      kp["wn"], kp["bn"], kp["gn"], kp["betan"], kp["wout_p"], kp["bout_p"])

    return out[:B, :action_dim]


# ---------------------------------------------------------------------------
# Pure-JAX reference (mirrors the PyTorch forward) and synthetic params
# ---------------------------------------------------------------------------
def reference_forward(params, state):
    B, Ls, D = state.shape
    h = params["w2"].shape[0]
    num_hidden = int(params["num_hidden"])
    h1 = jnp.tanh(jnp.einsum("ck,bkw->bcw", params["w1"], state) + params["b1"][None])
    h2 = jnp.tanh(jnp.einsum("cj,bjw->bcw", params["w2"], h1) + params["b2"][None])
    flat = h2.reshape(B, -1)                                  # (B, h*D), order (c, w)
    w3_flat = params["w3r"].reshape(h, h * D)
    s = jnp.tanh(flat @ w3_flat.T + params["b3"])
    for l in range(num_hidden):
        y = s @ params["wn"][l] + params["bn"][l]
        mean = y.mean(-1, keepdims=True)
        var = ((y - mean) ** 2).sum(-1, keepdims=True) / (h - 1)
        y = params["gn"][l] * (y - mean) / (jnp.sqrt(var) + 1e-6) + params["betan"][l]
        s = jnp.tanh(y)
    return jnp.tanh(s @ params["wout"] + params["bout"])


def init_params(key, *, h, state_length, state_dim, action_dim, num_layers):
    """Deterministic synthetic parameters with PyTorch-like uniform(-1/sqrt(fan_in), ...) init."""
    num_hidden = num_layers if num_layers >= 2 else 0
    nh_ = max(num_hidden, 1)
    ks = jax.random.split(key, 12)

    def unif(k, shape, fan_in):
        b = float(fan_in) ** -0.5
        return jax.random.uniform(k, shape, jnp.float32, -b, b)

    return {
        "w1": unif(ks[0], (2 * h, state_length), state_length),      # conv1 weight (o, ky)
        "b1": unif(ks[1], (2 * h, 1), state_length),                  # conv1 bias
        "w2": unif(ks[2], (h, 2 * h), 2 * h),                         # conv2 weight (o, c)
        "b2": unif(ks[3], (h, 1), 2 * h),                             # conv2 bias
        "w3r": unif(ks[4], (h, h, state_dim), h * state_dim),         # conv_out W reshaped (o, c, w)
        "b3": unif(ks[5], (1, h), h * state_dim),                     # conv_out bias
        "wn": unif(ks[6], (nh_, h, h), h),                            # MLP weights, pre-transposed
        "bn": unif(ks[7], (nh_, 1, h), h),                            # MLP biases
        "gn": jnp.ones((nh_, 1, h), jnp.float32),                     # LayerNorm gamma
        "betan": jnp.zeros((nh_, 1, h), jnp.float32),                 # LayerNorm beta
        "wout": unif(ks[8], (h, action_dim), h),                      # output linear, pre-transposed
        "bout": unif(ks[9], (1, action_dim), h),                      # output linear bias
        "num_hidden": num_hidden,
    }


if __name__ == "__main__":
    # Small config consistent with the module:
    #   actor_hidden_size=32, actor_num_layers=2, state_length=8, state_dim=16, action_dim=4
    B, state_length, state_dim = 2, 8, 16
    h, num_layers, action_dim = 32, 2, 4

    key = jax.random.PRNGKey(0)
    pkey, xkey, xkey2 = jax.random.split(key, 3)
    params = init_params(pkey, h=h, state_length=state_length, state_dim=state_dim,
                         action_dim=action_dim, num_layers=num_layers)
    kparams = prepare_kernel_params(params, state_dim)

    # Small-batch path (still 2 grid steps so both v7x TensorCores are used).
    state = jax.random.normal(xkey, (B, state_length, state_dim), jnp.float32)
    out = jax.block_until_ready(conv_actor_forward(kparams, state))
    ref = reference_forward(params, state)
    # bf16 MXU operands -> loosened tolerance vs. the f32 reference.
    np.testing.assert_allclose(np.asarray(out), np.asarray(ref), atol=3e-2, rtol=3e-2)

    # Multi-tile path (grid > 2, batch padding + tail slice).
    B2 = 20
    state2 = jax.random.normal(xkey2, (B2, state_length, state_dim), jnp.float32)
    out2 = jax.block_until_ready(conv_actor_forward(kparams, state2, max_batch_tile=8))
    ref2 = reference_forward(params, state2)
    np.testing.assert_allclose(np.asarray(out2), np.asarray(ref2), atol=3e-2, rtol=3e-2)

    # TODO(synk): the custom `LayerNorm` class from the ERL codebase is not shown in the
    # reference; unbiased-std + eps-on-std semantics are assumed here.
    print("KERNEL_OK")
</pallas_src>

<mosaic_0001>
module attributes {stable_mosaic.version = 11 : i64} {
  func.func @kernel(%arg0: i32, %arg1: memref<8x128xbf16, #tpu.memory_space<vmem>>, %arg2: memref<128x1024xbf16, #tpu.memory_space<vmem>>, %arg3: memref<1x1024xf32, #tpu.memory_space<vmem>>, %arg4: memref<1024x512xbf16, #tpu.memory_space<vmem>>, %arg5: memref<1x512xf32, #tpu.memory_space<vmem>>, %arg6: memref<512x32xbf16, #tpu.memory_space<vmem>>, %arg7: memref<1x32xf32, #tpu.memory_space<vmem>>, %arg8: memref<2x32x32xf32, #tpu.memory_space<vmem>>, %arg9: memref<2x1x32xf32, #tpu.memory_space<vmem>>, %arg10: memref<2x1x32xf32, #tpu.memory_space<vmem>>, %arg11: memref<2x1x32xf32, #tpu.memory_space<vmem>>, %arg12: memref<32x128xf32, #tpu.memory_space<vmem>>, %arg13: memref<1x128xf32, #tpu.memory_space<vmem>>, %arg14: memref<8x128xf32, #tpu.memory_space<vmem>>) attributes {dimension_semantics = [#tpu.dimension_semantics<parallel>], iteration_bounds = array<i64: 2>, scalar_prefetch = 0 : i64, scratch_operands = 0 : i64, tpu.core_type = #tpu.core_type<tc>, window_params = [{transform_indices = @transform_0, window_bounds = array<i64: 8, 128>}, {pipeline_mode = #tpu.pipeline_mode<synchronous>, transform_indices = @transform_1, window_bounds = array<i64: 128, 1024>}, {pipeline_mode = #tpu.pipeline_mode<synchronous>, transform_indices = @transform_2, window_bounds = array<i64: 1, 1024>}, {pipeline_mode = #tpu.pipeline_mode<synchronous>, transform_indices = @transform_3, window_bounds = array<i64: 1024, 512>}, {pipeline_mode = #tpu.pipeline_mode<synchronous>, transform_indices = @transform_4, window_bounds = array<i64: 1, 512>}, {pipeline_mode = #tpu.pipeline_mode<synchronous>, transform_indices = @transform_5, window_bounds = array<i64: 512, 32>}, {pipeline_mode = #tpu.pipeline_mode<synchronous>, transform_indices = @transform_6, window_bounds = array<i64: 1, 32>}, {pipeline_mode = #tpu.pipeline_mode<synchronous>, transform_indices = @transform_7, window_bounds = array<i64: 2, 32, 32>}, {pipeline_mode = #tpu.pipeline_mode<synchronous>, transform_indices = @transform_8, window_bounds = array<i64: 2, 1, 32>}, {pipeline_mode = #tpu.pipeline_mode<synchronous>, transform_indices = @transform_9, window_bounds = array<i64: 2, 1, 32>}, {pipeline_mode = #tpu.pipeline_mode<synchronous>, transform_indices = @transform_10, window_bounds = array<i64: 2, 1, 32>}, {pipeline_mode = #tpu.pipeline_mode<synchronous>, transform_indices = @transform_11, window_bounds = array<i64: 32, 128>}, {pipeline_mode = #tpu.pipeline_mode<synchronous>, transform_indices = @transform_12, window_bounds = array<i64: 1, 128>}, {transform_indices = @transform_13, window_bounds = array<i64: 8, 128>}]} {
    %c0 = arith.constant 0 : index
    %c0_0 = arith.constant 0 : index
    %0 = vector.load %arg1[%c0, %c0_0] : memref<8x128xbf16, #tpu.memory_space<vmem>>, vector<8x128xbf16>
    %c0_1 = arith.constant 0 : index
    %c0_2 = arith.constant 0 : index
    %1 = vector.load %arg2[%c0_1, %c0_2] : memref<128x1024xbf16, #tpu.memory_space<vmem>>, vector<128x1024xbf16>
    %cst = arith.constant dense<0.000000e+00> : vector<8x1024xf32>
    %2 = tpu.matmul %0, %1, %cst {dimension_numbers = #tpu.dot_dimension_numbers<[1], [0], [0], [1], [0, 0, 1, 1], [], []>} : vector<8x128xbf16>, vector<128x1024xbf16>, vector<8x1024xf32> -> vector<8x1024xf32>
    %c0_3 = arith.constant 0 : index
    %c0_4 = arith.constant 0 : index
    %3 = vector.load %arg3[%c0_3, %c0_4] : memref<1x1024xf32, #tpu.memory_space<vmem>>, vector<1x1024xf32>
    %4 = vector.broadcast %3 : vector<1x1024xf32> to vector<8x1024xf32>
    %5 = arith.addf %2, %4 : vector<8x1024xf32>
    %6 = arith.truncf %5 : vector<8x1024xf32> to vector<8x1024xbf16>
    %7 = math.tanh %6 : vector<8x1024xbf16>
    %c0_5 = arith.constant 0 : index
    %c0_6 = arith.constant 0 : index
    %8 = vector.load %arg4[%c0_5, %c0_6] : memref<1024x512xbf16, #tpu.memory_space<vmem>>, vector<1024x512xbf16>
    %cst_7 = arith.constant dense<0.000000e+00> : vector<8x512xf32>
    %9 = tpu.matmul %7, %8, %cst_7 {dimension_numbers = #tpu.dot_dimension_numbers<[1], [0], [0], [1], [0, 0, 1, 1], [], []>} : vector<8x1024xbf16>, vector<1024x512xbf16>, vector<8x512xf32> -> vector<8x512xf32>
    %c0_8 = arith.constant 0 : index
    %c0_9 = arith.constant 0 : index
    %10 = vector.load %arg5[%c0_8, %c0_9] : memref<1x512xf32, #tpu.memory_space<vmem>>, vector<1x512xf32>
    %11 = vector.broadcast %10 : vector<1x512xf32> to vector<8x512xf32>
    %12 = arith.addf %9, %11 : vector<8x512xf32>
    %13 = arith.truncf %12 : vector<8x512xf32> to vector<8x512xbf16>
    %14 = math.tanh %13 : vector<8x512xbf16>
    %c0_10 = arith.constant 0 : index
    %c0_11 = arith.constant 0 : index
    %15 = vector.load %arg6[%c0_10, %c0_11] : memref<512x32xbf16, #tpu.memory_space<vmem>>, vector<512x32xbf16>
    %cst_12 = arith.constant dense<0.000000e+00> : vector<8x32xf32>
    %16 = tpu.matmul %14, %15, %cst_12 {dimension_numbers = #tpu.dot_dimension_numbers<[1], [0], [0], [1], [0, 0, 1, 1], [], []>} : vector<8x512xbf16>, vector<512x32xbf16>, vector<8x32xf32> -> vector<8x32xf32>
    %c0_13 = arith.constant 0 : index
    %c0_14 = arith.constant 0 : index
    %17 = vector.load %arg7[%c0_13, %c0_14] : memref<1x32xf32, #tpu.memory_space<vmem>>, vector<1x32xf32>
    %18 = vector.broadcast %17 : vector<1x32xf32> to vector<8x32xf32>
    %19 = arith.addf %16, %18 : vector<8x32xf32>
    %20 = math.tanh %19 : vector<8x32xf32>
    %c0_15 = arith.constant 0 : index
    %c0_16 = arith.constant 0 : index
    %c0_17 = arith.constant 0 : index
    %21 = vector.load %arg8[%c0_15, %c0_16, %c0_17] : memref<2x32x32xf32, #tpu.memory_space<vmem>>, vector<1x32x32xf32>
    %22 = vector.shape_cast %21 : vector<1x32x32xf32> to vector<32x32xf32>
    %cst_18 = arith.constant dense<0.000000e+00> : vector<8x32xf32>
    %23 = tpu.matmul %20, %22, %cst_18 {dimension_numbers = #tpu.dot_dimension_numbers<[1], [0], [0], [1], [0, 0, 1, 1], [], []>} : vector<8x32xf32>, vector<32x32xf32>, vector<8x32xf32> -> vector<8x32xf32>
    %c0_19 = arith.constant 0 : index
    %c0_20 = arith.constant 0 : index
    %c0_21 = arith.constant 0 : index
    %24 = vector.load %arg9[%c0_19, %c0_20, %c0_21] : memref<2x1x32xf32, #tpu.memory_space<vmem>>, vector<1x1x32xf32>
    %25 = vector.shape_cast %24 : vector<1x1x32xf32> to vector<1x32xf32>
    %26 = vector.broadcast %25 : vector<1x32xf32> to vector<8x32xf32>
    %27 = arith.addf %23, %26 : vector<8x32xf32>
    %cst_22 = arith.constant dense<0.000000e+00> : vector<8xf32>
    %28 = vector.multi_reduction <add>, %27, %cst_22 [1] : vector<8x32xf32> to vector<8xf32>
    %29 = vector.shape_cast %28 : vector<8xf32> to vector<8x1xf32>
    %cst_23 = arith.constant 3.200000e+01 : f32
    %30 = vector.broadcast %cst_23 : f32 to vector<8x1xf32>
    %31 = arith.divf %29, %30 : vector<8x1xf32>
    %32 = vector.broadcast %31 : vector<8x1xf32> to vector<8x32xf32>
    %33 = arith.subf %27, %32 : vector<8x32xf32>
    %34 = arith.mulf %33, %33 : vector<8x32xf32>
    %cst_24 = arith.constant dense<0.000000e+00> : vector<8xf32>
    %35 = vector.multi_reduction <add>, %34, %cst_24 [1] : vector<8x32xf32> to vector<8xf32>
    %36 = vector.shape_cast %35 : vector<8xf32> to vector<8x1xf32>
    %cst_25 = arith.constant 0.0322580636 : f32
    %37 = vector.broadcast %cst_25 : f32 to vector<8x1xf32>
    %38 = arith.mulf %36, %37 : vector<8x1xf32>
    %39 = math.sqrt %38 : vector<8x1xf32>
    %cst_26 = arith.constant 9.99999997E-7 : f32
    %40 = vector.broadcast %cst_26 : f32 to vector<8x1xf32>
    %41 = arith.addf %39, %40 : vector<8x1xf32>
    %42 = tpu.reciprocal %41 : vector<8x1xf32> -> vector<8x1xf32>
    %c0_27 = arith.constant 0 : index
    %c0_28 = arith.constant 0 : index
    %c0_29 = arith.constant 0 : index
    %43 = vector.load %arg10[%c0_27, %c0_28, %c0_29] : memref<2x1x32xf32, #tpu.memory_space<vmem>>, vector<1x1x32xf32>
    %44 = vector.shape_cast %43 : vector<1x1x32xf32> to vector<1x32xf32>
    %45 = vector.broadcast %31 : vector<8x1xf32> to vector<8x32xf32>
    %46 = arith.subf %27, %45 : vector<8x32xf32>
    %47 = vector.broadcast %42 : vector<8x1xf32> to vector<8x32xf32>
    %48 = arith.mulf %46, %47 : vector<8x32xf32>
    %49 = vector.broadcast %44 : vector<1x32xf32> to vector<8x32xf32>
    %50 = arith.mulf %49, %48 : vector<8x32xf32>
    %c0_30 = arith.constant 0 : index
    %c0_31 = arith.constant 0 : index
    %c0_32 = arith.constant 0 : index
    %51 = vector.load %arg11[%c0_30, %c0_31, %c0_32] : memref<2x1x32xf32, #tpu.memory_space<vmem>>, vector<1x1x32xf32>
    %52 = vector.shape_cast %51 : vector<1x1x32xf32> to vector<1x32xf32>
    %53 = vector.broadcast %52 : vector<1x32xf32> to vector<8x32xf32>
    %54 = arith.addf %50, %53 : vector<8x32xf32>
    %55 = math.tanh %54 : vector<8x32xf32>
    %c1 = arith.constant 1 : index
    %c0_33 = arith.constant 0 : index
    %c0_34 = arith.constant 0 : index
    %56 = vector.load %arg8[%c1, %c0_33, %c0_34] : memref<2x32x32xf32, #tpu.memory_space<vmem>>, vector<1x32x32xf32>
    %57 = vector.shape_cast %56 : vector<1x32x32xf32> to vector<32x32xf32>
    %cst_35 = arith.constant dense<0.000000e+00> : vector<8x32xf32>
    %58 = tpu.matmul %55, %57, %cst_35 {dimension_numbers = #tpu.dot_dimension_numbers<[1], [0], [0], [1], [0, 0, 1, 1], [], []>} : vector<8x32xf32>, vector<32x32xf32>, vector<8x32xf32> -> vector<8x32xf32>
    %c1_36 = arith.constant 1 : index
    %c0_37 = arith.constant 0 : index
    %c0_38 = arith.constant 0 : index
    %59 = vector.load %arg9[%c1_36, %c0_37, %c0_38] : memref<2x1x32xf32, #tpu.memory_space<vmem>>, vector<1x1x32xf32>
    %60 = vector.shape_cast %59 : vector<1x1x32xf32> to vector<1x32xf32>
    %61 = vector.broadcast %60 : vector<1x32xf32> to vector<8x32xf32>
    %62 = arith.addf %58, %61 : vector<8x32xf32>
    %cst_39 = arith.constant dense<0.000000e+00> : vector<8xf32>
    %63 = vector.multi_reduction <add>, %62, %cst_39 [1] : vector<8x32xf32> to vector<8xf32>
    %64 = vector.shape_cast %63 : vector<8xf32> to vector<8x1xf32>
    %cst_40 = arith.constant 3.200000e+01 : f32
    %65 = vector.broadcast %cst_40 : f32 to vector<8x1xf32>
    %66 = arith.divf %64, %65 : vector<8x1xf32>
    %67 = vector.broadcast %66 : vector<8x1xf32> to vector<8x32xf32>
    %68 = arith.subf %62, %67 : vector<8x32xf32>
    %69 = arith.mulf %68, %68 : vector<8x32xf32>
    %cst_41 = arith.constant dense<0.000000e+00> : vector<8xf32>
    %70 = vector.multi_reduction <add>, %69, %cst_41 [1] : vector<8x32xf32> to vector<8xf32>
    %71 = vector.shape_cast %70 : vector<8xf32> to vector<8x1xf32>
    %cst_42 = arith.constant 0.0322580636 : f32
    %72 = vector.broadcast %cst_42 : f32 to vector<8x1xf32>
    %73 = arith.mulf %71, %72 : vector<8x1xf32>
    %74 = math.sqrt %73 : vector<8x1xf32>
    %cst_43 = arith.constant 9.99999997E-7 : f32
    %75 = vector.broadcast %cst_43 : f32 to vector<8x1xf32>
    %76 = arith.addf %74, %75 : vector<8x1xf32>
    %77 = tpu.reciprocal %76 : vector<8x1xf32> -> vector<8x1xf32>
    %c1_44 = arith.constant 1 : index
    %c0_45 = arith.constant 0 : index
    %c0_46 = arith.constant 0 : index
    %78 = vector.load %arg10[%c1_44, %c0_45, %c0_46] : memref<2x1x32xf32, #tpu.memory_space<vmem>>, vector<1x1x32xf32>
    %79 = vector.shape_cast %78 : vector<1x1x32xf32> to vector<1x32xf32>
    %80 = vector.broadcast %66 : vector<8x1xf32> to vector<8x32xf32>
    %81 = arith.subf %62, %80 : vector<8x32xf32>
    %82 = vector.broadcast %77 : vector<8x1xf32> to vector<8x32xf32>
    %83 = arith.mulf %81, %82 : vector<8x32xf32>
    %84 = vector.broadcast %79 : vector<1x32xf32> to vector<8x32xf32>
    %85 = arith.mulf %84, %83 : vector<8x32xf32>
    %c1_47 = arith.constant 1 : index
    %c0_48 = arith.constant 0 : index
    %c0_49 = arith.constant 0 : index
    %86 = vector.load %arg11[%c1_47, %c0_48, %c0_49] : memref<2x1x32xf32, #tpu.memory_space<vmem>>, vector<1x1x32xf32>
    %87 = vector.shape_cast %86 : vector<1x1x32xf32> to vector<1x32xf32>
    %88 = vector.broadcast %87 : vector<1x32xf32> to vector<8x32xf32>
    %89 = arith.addf %85, %88 : vector<8x32xf32>
    %90 = math.tanh %89 : vector<8x32xf32>
    %c0_50 = arith.constant 0 : index
    %c0_51 = arith.constant 0 : index
    %91 = vector.load %arg12[%c0_50, %c0_51] : memref<32x128xf32, #tpu.memory_space<vmem>>, vector<32x128xf32>
    %cst_52 = arith.constant dense<0.000000e+00> : vector<8x128xf32>
    %92 = tpu.matmul %90, %91, %cst_52 {dimension_numbers = #tpu.dot_dimension_numbers<[1], [0], [0], [1], [0, 0, 1, 1], [], []>} : vector<8x32xf32>, vector<32x128xf32>, vector<8x128xf32> -> vector<8x128xf32>
    %c0_53 = arith.constant 0 : index
    %c0_54 = arith.constant 0 : index
    %93 = vector.load %arg13[%c0_53, %c0_54] : memref<1x128xf32, #tpu.memory_space<vmem>>, vector<1x128xf32>
    %94 = vector.broadcast %93 : vector<1x128xf32> to vector<8x128xf32>
    %95 = arith.addf %92, %94 : vector<8x128xf32>
    %96 = math.tanh %95 : vector<8x128xf32>
    %c0_55 = arith.constant 0 : index
    %c0_56 = arith.constant 0 : index
    %97 = vector.load %arg14[%c0_55, %c0_56] : memref<8x128xf32, #tpu.memory_space<vmem>>, vector<8x128xf32>
    tpu.vector_store %arg14[%c0_55, %c0_56], %96 {strides = array<i32>} : memref<8x128xf32, #tpu.memory_space<vmem>>, vector<8x128xf32>,
    return
  }
  func.func @transform_0(%arg0: i32) -> (i32, i32) {
    %c0_i32 = arith.constant 0 : i32
    %c0_i32_0 = arith.constant 0 : i32
    return %arg0, %c0_i32 : i32, i32
  }
  func.func @transform_1(%arg0: i32) -> (i32, i32) {
    %c0_i32 = arith.constant 0 : i32
    %c0_i32_0 = arith.constant 0 : i32
    %c0_i32_1 = arith.constant 0 : i32
    return %c0_i32, %c0_i32_0 : i32, i32
  }
  func.func @transform_2(%arg0: i32) -> (i32, i32) {
    %c0_i32 = arith.constant 0 : i32
    %c0_i32_0 = arith.constant 0 : i32
    %c0_i32_1 = arith.constant 0 : i32
    return %c0_i32, %c0_i32_0 : i32, i32
  }
  func.func @transform_3(%arg0: i32) -> (i32, i32) {
    %c0_i32 = arith.constant 0 : i32
    %c0_i32_0 = arith.constant 0 : i32
    %c0_i32_1 = arith.constant 0 : i32
    return %c0_i32, %c0_i32_0 : i32, i32
  }
  func.func @transform_4(%arg0: i32) -> (i32, i32) {
    %c0_i32 = arith.constant 0 : i32
    %c0_i32_0 = arith.constant 0 : i32
    %c0_i32_1 = arith.constant 0 : i32
    return %c0_i32, %c0_i32_0 : i32, i32
  }
  func.func @transform_5(%arg0: i32) -> (i32, i32) {
    %c0_i32 = arith.constant 0 : i32
    %c0_i32_0 = arith.constant 0 : i32
    %c0_i32_1 = arith.constant 0 : i32
    return %c0_i32, %c0_i32_0 : i32, i32
  }
  func.func @transform_6(%arg0: i32) -> (i32, i32) {
    %c0_i32 = arith.constant 0 : i32
    %c0_i32_0 = arith.constant 0 : i32
    %c0_i32_1 = arith.constant 0 : i32
    return %c0_i32, %c0_i32_0 : i32, i32
  }
  func.func @transform_7(%arg0: i32) -> (i32, i32, i32) {
    %c0_i32 = arith.constant 0 : i32
    %c0_i32_0 = arith.constant 0 : i32
    %c0_i32_1 = arith.constant 0 : i32
    %c0_i32_2 = arith.constant 0 : i32
    return %c0_i32, %c0_i32_0, %c0_i32_1 : i32, i32, i32
  }
  func.func @transform_8(%arg0: i32) -> (i32, i32, i32) {
    %c0_i32 = arith.constant 0 : i32
    %c0_i32_0 = arith.constant 0 : i32
    %c0_i32_1 = arith.constant 0 : i32
    %c0_i32_2 = arith.constant 0 : i32
    return %c0_i32, %c0_i32_0, %c0_i32_1 : i32, i32, i32
  }
  func.func @transform_9(%arg0: i32) -> (i32, i32, i32) {
    %c0_i32 = arith.constant 0 : i32
    %c0_i32_0 = arith.constant 0 : i32
    %c0_i32_1 = arith.constant 0 : i32
    %c0_i32_2 = arith.constant 0 : i32
    return %c0_i32, %c0_i32_0, %c0_i32_1 : i32, i32, i32
  }
  func.func @transform_10(%arg0: i32) -> (i32, i32, i32) {
    %c0_i32 = arith.constant 0 : i32
    %c0_i32_0 = arith.constant 0 : i32
    %c0_i32_1 = arith.constant 0 : i32
    %c0_i32_2 = arith.constant 0 : i32
    return %c0_i32, %c0_i32_0, %c0_i32_1 : i32, i32, i32
  }
  func.func @transform_11(%arg0: i32) -> (i32, i32) {
    %c0_i32 = arith.constant 0 : i32
    %c0_i32_0 = arith.constant 0 : i32
    %c0_i32_1 = arith.constant 0 : i32
    return %c0_i32, %c0_i32_0 : i32, i32
  }
  func.func @transform_12(%arg0: i32) -> (i32, i32) {
    %c0_i32 = arith.constant 0 : i32
    %c0_i32_0 = arith.constant 0 : i32
    %c0_i32_1 = arith.constant 0 : i32
    return %c0_i32, %c0_i32_0 : i32, i32
  }
  func.func @transform_13(%arg0: i32) -> (i32, i32) {
    %c0_i32 = arith.constant 0 : i32
    %c0_i32_0 = arith.constant 0 : i32
    return %arg0, %c0_i32 : i32, i32
  }
}

</mosaic_0001>

<bundles_post_ra>
// kernel: tpu_custom_call.1
= control target key start
LH: loop header
LB: loop body
LE: loop exit
PB: predicated region body
PF: predicated region fallthrough
CT: control target
= control target key end

     0   :  { %18 = vsyncpa [#allocation3], 0  ;;  %s5349_s0 = inlined_call_operand.vmem [shape: bf16[16,128], index: 0, kind: input, shape index: {}]   ;;  %s5350_s1 = inlined_call_operand.hbm [shape: bf16[128,1024], index: 1, kind: input, shape index: {}]   ;;  %s5351_s2 = inlined_call_operand.vmem [shape: f32[1,1024], index: 2, kind: input, shape index: {}]   ;;  %s5352_s3 = inlined_call_operand.hbm [shape: bf16[1024,512], index: 3, kind: input, shape index: {}]   ;;  %s5353_s4 = inlined_call_operand.vmem [shape: f32[1,512], index: 4, kind: input, shape index: {}]   ;;  %s5354_s5 = inlined_call_operand.vmem [shape: bf16[512,32], index: 5, kind: input, shape index: {}]   ;;  %s5355_s6 = inlined_call_operand.vmem [shape: f32[1,32], index: 6, kind: input, shape index: {}]   ;;  %s5356_s7 = inlined_call_operand.vmem [shape: f32[2,32,32], index: 7, kind: input, shape index: {}]   ;;  %s5357_s8 = inlined_call_operand.vmem [shape: f32[2,1,32], index: 8, kind: input, shape index: {}]   ;;  %s5358_s9 = inlined_call_operand.vmem [shape: f32[2,1,32], index: 9, kind: input, shape index: {}]   ;;  %s5359_s10 = inlined_call_operand.vmem [shape: f32[2,1,32], index: 10, kind: input, shape index: {}]   ;;  %s5360_s11 = inlined_call_operand.vmem [shape: f32[32,128], index: 11, kind: input, shape index: {}]   ;;  %s5361_s12 = inlined_call_operand.vmem [shape: f32[1,128], index: 12, kind: input, shape index: {}]   ;;  %s5362_s13 = inlined_call_operand.hbm [shape: f32[16,128], index: 13, kind: output, shape index: {}]  }
   0x1   :  { %19 = vsyncpa [#allocation6], 0 }
   0x2   :  { %20 = vsyncpa [#allocation4], 0 }
   0x3   :  { %22 = vsyncpa [#allocation4 + $0x1], 0  ;;  %s4942_s25 = smov 0   ;;  %s4944_s26 = smov 0  }
   0x4   :  { %s4946_s27 = smov 0   ;;  %s4948_s28 = smov 0  }
   0x5 LB: > { %5369 = sst [smem:[#allocation11_spill]] %s4848_s25  ;;  %s4963_s29 = sadd.s32 4294967295, %s4860_s28   ;;  %s4860_s28 = sphi %s4948_s28, %s5385_s28   ;;  %s4856_s27 = sphi %s4946_s27, %s5387_s27   ;;  %s4852_s26 = sphi %s4944_s26, %s5389_s26   ;;  %s4848_s25 = sphi %s4942_s25, %s5388_s25  }
   0x6   : > { %5370 = sst [smem:[#allocation12_spill]] %s4856_s27  ;;  %s3741_s30 = sadd.s32 4294967294, %s4860_s28  }
   0x7   : > { %s4967_s14 = sadd.s32 1, %s4860_s28   ;;  %s313_s15 = sadd.s32 1, %s4856_s27 }
   0x8   : > { %5371 = sst [smem:[#allocation13_spill]] %s4967_s14  ;;  %s310_s16 = ssub.s32 %s4860_s28, %s4967_s14 }
   0x9   : > { %p323_p0 = scmp.ne.s32.totalorder %s4856_s27, %s4852_s26  ;;  %p311_p1 = scmp.eq.s32.totalorder %s310_s16, 0 }
   0xa   : > { %p324_p2 = scmp.eq.s32.totalorder %s4963_s29, 1  ;;  %p329_p3 = scmp.ne.s32.totalorder %s4852_s26, %s4848_s25 }
   0xb   : > { %p330_p4 = scmp.eq.s32.totalorder %s3741_s30, 1  ;;  %p3742_p7 = scmp.ge.s32.totalorder %s4860_s28, 1 }
   0xc   : > { %s4978_s17 = scalar_select %p311_p1, %s4856_s27, %s313_s15  }
   0xd   : > { %p4980_p5 = por %p324_p2, %p323_p0  ;;  %p4984_p6 = por %p330_p4, %p329_p3 }
   0xe   : > { %5372 = sst [smem:[#allocation14_spill]] %s4978_s17  ;;  %p337_p8 = scmp.lt.s32.totalorder %s4860_s28, 3 }
   0xf   : > { %s5374_s19 = scalar_select %p4984_p6, 1, 0 }
  0x10   : > { %p5364_p9 = scmp.eq.s32.totalorder %s4963_s29, 0  ;;  %p4991_p10 = pnand %p3742_p7, %p337_p8 }
  0x11   : > { %5375 = sst [smem:[#allocation15_spill]] %s5374_s19  ;;  %s4862_s21 = smov [#allocation2]  }
  0x12   : > { %s349_s22 = sshll.u32 %s4862_s21, 4  ;;  %p4227_p11 = pneg %p4991_p10  ;;  %s350_s22 = int_to_ptr.vmem [resolvable:$true] %s349_s22 }
  0x13   : > { %s4863_s24 = smov [#allocation5]   ;;  %s4751_s15 = scalar_lea.vmem %s350_s22, 8192 }
  0x14   : > { %p4999_p12 = pnand %p5364_p9, %p4227_p11  ;;  %s365_s30 = sshll.u32 %s4863_s24, 4  ;;  %s366_s30 = int_to_ptr.vmem [resolvable:$true] %s365_s30 }
  0x15   : > { %p4752_p0 = scmp.ne.s32.totalorder %s350_s22, %s4751_s15  ;;  %p4759_p3 = scmp.lt.s32.totalorder %s350_s22, %s350_s22 }
  0x16   : > { %p4742_p13 = pneg %p4999_p12  ;;  %p4760_p4 = scmp.lt.s32.totalorder %s4751_s15, %s4751_s15 }
  0x18   : > { %p4754_p1 = pnand %p4752_p0, %p4742_p13  ;;  %p4761_p7 = por %p4760_p4, %p4759_p3 }
  0x1a   : > { %p4755_p2 = pneg %p4754_p1 }
  0x1c   : > { %p4762_p8 = pnand %p4761_p7, %p4755_p2 }
  0x1e   : > { %4765 = shalt.err (!%p4762_p8)
}
  0x1f   : > { %s4864_s16 = smov 512   ;;  %s4865_s21 = smov 32  }
  0x20   : > { %4230 = dma.hbm_to_vmem [thread:$0]  (!%p4999_p12), %s5350_s1, 8192, %s350_s22, [#allocation3], %s4864_s16, %s4864_s16, %s4865_s21  }
  0x21   : > { %s4777_s27 = scalar_lea.vmem %s366_s30, 32768  ;;  %p4785_p9 = scmp.lt.s32.totalorder %s366_s30, %s366_s30 }
  0x22   : > { %p4778_p11 = scmp.ne.s32.totalorder %s366_s30, %s4777_s27  ;;  %p4786_p6 = scmp.lt.s32.totalorder %s4777_s27, %s4777_s27 }
  0x24   : > { %p4780_p0 = pnand %p4778_p11, %p4742_p13  ;;  %p4787_p3 = por %p4786_p6, %p4785_p9 }
  0x26   : > { %p4781_p1 = pneg %p4780_p0 }
  0x28   : > { %p4788_p2 = pnand %p4787_p3, %p4781_p1 }
  0x2a   : > { %4791 = shalt.err (!%p4788_p2)
}
  0x2b   : > { %s4866_s15 = smov 256   ;;  %s4867_s14 = smov 16  }
  0x2c   : > { %4233 = dma.hbm_to_vmem [thread:$0]  (!%p4999_p12), %s5352_s3, 32768, %s366_s30, [#allocation6], %s4866_s15, %s4866_s15, %s4867_s14  }
  0x2d   : > { %415 = sbr.rel (%p4991_p10) target bundleno = 2219 (0x8ab), region = 72  ;;  %p5378_p4 = scmp.eq.s32.totalorder (!%p4991_p10), %s4963_s29, 0 }
  0x32   : > { %4835 = dma.done.wait (%p5378_p4), [#allocation3], 8192   ;;  %p5379_p13 = pmov %p5378_p4 }
  0x33   : > { %p5380_p6 = pmov %p5378_p4 }
  0x34   : > { %4837 = vsyncadd (%p5379_p13), [#allocation3], 4294959104 }
  0x35   : > { %4839 = dma.done.wait (%p5380_p6), [#allocation6], 32768   ;;  %p5381_p9 = pmov %p5378_p4 }
  0x36   : > { %v4868_v0 = vmov 0   ;;  %v524_v1 = vld [vmem:[#allocation2 + $0x1c0] sm:$0xff]  ;;  %v525_v3 = vld [vmem:[#allocation2 + $0x1c8] sm:$0xff]  ;;  %p462_p10 = scmp.lt.s32.totalorder %s4963_s29, 1  ;;  %v526_v62 = vld [vmem:[#allocation2 + $0x1d0] sm:$0xff]  ;;  %vm4870_vm0 = vmmov 0  }
  0x37   : > { %4841 = vsyncadd (%p5381_p9), [#allocation6], 4294934528  ;;  %926 = vmatprep.mubr.bf16.mxu0 %v4868_v0  ;;  %967 = vmatprep.mubr.bf16.mxu1 %v4868_v0  ;;  %v528_v2 = vld [vmem:[#allocation2 + $0x1e0] sm:$0xff]  ;;  %v529_v5 = vld [vmem:[#allocation2 + $0x1e8] sm:$0xff]  ;;  %vm3323_vm1 = vcmask 261120   ;;  %s459_s16 = sand.u32 1, %s4852_s26  }
  0x38   : > { %v3808_v4 = vcombine.high %v524_v1, %v528_v2  ;;  %v3807_v6 = vcombine.low %v524_v1, %v528_v2  ;;  %v516_v7 = vld [vmem:[#allocation2 + $0x180] sm:$0xff]  ;;  %v3810_v9 = vcombine.high %v525_v3, %v529_v5  ;;  %v3809_v10 = vcombine.low %v525_v3, %v529_v5  ;;  %v517_v12 = vld [vmem:[#allocation2 + $0x188] sm:$0xff]  ;;  %s463_s25 = scalar_select %p462_p10, %s4963_s29, 1  ;;  %v530_v1 = vld [vmem:[#allocation2 + $0x1f0] sm:$0xff] }
  0x39   : > { %v520_v8 = vld [vmem:[#allocation2 + $0x1a0] sm:$0xff]  ;;  %v521_v13 = vld [vmem:[#allocation2 + $0x1a8] sm:$0xff]  ;;  %v527_v2 = vld [vmem:[#allocation2 + $0x1d8] sm:$0xff]  ;;  %s3749_s21 = sshll.u32 %s459_s16, 3  ;;  %s4122_s24 = sshll.u32 %s4963_s29, 7 }
  0x3a   : > { %v3800_v11 = vcombine.high %v516_v7, %v520_v8  ;;  %v508_v14 = vld [vmem:[#allocation2 + $0x140] sm:$0xff]  ;;  %894 = vmatprep.subr.bf16.mxu0 %v3808_v4  ;;  %v3802_v15 = vcombine.high %v517_v12, %v521_v13  ;;  %v509_v17 = vld [vmem:[#allocation2 + $0x148] sm:$0xff]  ;;  %935 = vmatprep.subr.bf16.mxu1 %v3810_v9  ;;  %v3799_v19 = vcombine.low %v516_v7, %v520_v8  ;;  %s3750_s27 = sshll.u32 %s463_s25, 2  ;;  %v531_v3 = vld [vmem:[#allocation2 + $0x1f8] sm:$0xff]  ;;  %s461_s15 = scalar_lea.vmem [#allocation7], %s3749_s21 }
  0x3b   : > { %v512_v16 = vld [vmem:[#allocation2 + $0x160] sm:$0xff]  ;;  %v513_v18 = vld [vmem:[#allocation2 + $0x168] sm:$0xff]  ;;  %895 = vmatpush1.bf16.msra.mxu0 %v3807_v6  ;;  %936 = vmatpush1.bf16.msra.mxu1 %v3809_v10  ;;  %v3801_v20 = vcombine.low %v517_v12, %v521_v13  ;;  %s465_s19 = scalar_lea.vmem %s5349_s0, %s3750_s27  ;;  %v3812_v6 = vcombine.high %v526_v62, %v530_v1  ;;  %v518_v7 = vld [vmem:[#allocation2 + $0x190] sm:$0xff]  ;;  %v3814_v8 = vcombine.high %v527_v2, %v531_v3  ;;  %s3660_s25 = sshll.u32 %s461_s15, 4  ;;  %s3661_s25 = int_to_ptr.vmem [resolvable:$true] %s3660_s25 }
  0x3c   : > { %896 = vmatprep.subr.bf16.mxu0 %v3800_v11  ;;  %v3792_v21 = vcombine.high %v508_v14, %v512_v16  ;;  %937 = vmatprep.subr.bf16.mxu1 %v3802_v15  ;;  %v3794_v22 = vcombine.high %v509_v17, %v513_v18  ;;  %v500_v23 = vld [vmem:[#allocation2 + $0x100] sm:$0xff]  ;;  %v501_v25 = vld [vmem:[#allocation2 + $0x108] sm:$0xff]  ;;  %v3791_v27 = vcombine.low %v508_v14, %v512_v16  ;;  %v522_v9 = vld [vmem:[#allocation2 + $0x1b0] sm:$0xff]  ;;  %s5314_s17 = scalar_lea.hbm %s5362_s13, %s4122_s24  ;;  %s4792_s20 = scalar_lea.vmem %s3661_s25, 128 }
  0x3d   : > { %v504_v24 = vld [vmem:[#allocation2 + $0x120] sm:$0xff]  ;;  %v505_v26 = vld [vmem:[#allocation2 + $0x128] sm:$0xff]  ;;  %v3793_v28 = vcombine.low %v509_v17, %v513_v18  ;;  %v519_v10 = vld [vmem:[#allocation2 + $0x198] sm:$0xff]  ;;  %v3811_v13 = vcombine.low %v526_v62, %v530_v1  ;;  %v3813_v14 = vcombine.low %v527_v2, %v531_v3  ;;  %v3804_v15 = vcombine.high %v518_v7, %v522_v9  ;;  %p4793_p12 = scmp.ne.s32.totalorder %s3661_s25, %s4792_s20  ;;  %s4871_s22 = smov [#allocation7]  }
  0x3e   : > { %v3784_v29 = vcombine.high %v500_v23, %v504_v24  ;;  %v3786_v30 = vcombine.high %v501_v25, %v505_v26  ;;  %v492_v31 = vld [vmem:[#allocation2 + $0xc0] sm:$0xff]  ;;  %v493_v33 = vld [vmem:[#allocation2 + $0xc8] sm:$0xff]  ;;  %v3783_v35 = vcombine.low %v500_v23, %v504_v24  ;;  %v3785_v36 = vcombine.low %v501_v25, %v505_v26  ;;  %v523_v11 = vld [vmem:[#allocation2 + $0x1b8] sm:$0xff]  ;;  %s4796_s23 = sshll.u32 %s4871_s22, 4  ;;  %s4797_s23 = int_to_ptr.vmem [resolvable:$false] %s4796_s23 }
  0x3f   : > { %897 = vmatpush1.bf16.msra.mxu0 %v3799_v19  ;;  %938 = vmatpush1.bf16.msra.mxu1 %v3801_v20  ;;  %v496_v32 = vld [vmem:[#allocation2 + $0xe0] sm:$0xff]  ;;  %v497_v34 = vld [vmem:[#allocation2 + $0xe8] sm:$0xff]  ;;  %v510_v16 = vld [vmem:[#allocation2 + $0x150] sm:$0xff]  ;;  %v3806_v17 = vcombine.high %v519_v10, %v523_v11  ;;  %p4794_p7 = pnand %p4793_p12, %p4980_p5  ;;  %s4798_s29 = scalar_lea.vmem %s4797_s23, 256 }
  0x40   : > { %898 = vmatprep.subr.bf16.mxu0 %v3792_v21  ;;  %939 = vmatprep.subr.bf16.mxu1 %v3794_v22  ;;  %v3776_v37 = vcombine.high %v492_v31, %v496_v32  ;;  %v3778_v38 = vcombine.high %v493_v33, %v497_v34  ;;  %v484_v39 = vld [vmem:[#allocation2 + $0x80] sm:$0xff]  ;;  %v485_v41 = vld [vmem:[#allocation2 + $0x88] sm:$0xff]  ;;  %v3775_v43 = vcombine.low %v492_v31, %v496_v32  ;;  %v514_v18 = vld [vmem:[#allocation2 + $0x170] sm:$0xff]  ;;  %p4799_p11 = scmp.lt.s32.totalorder %s3661_s25, %s4797_s23  ;;  %p4800_p0 = scmp.lt.s32.totalorder %s4798_s29, %s4792_s20 }
  0x41   : > { %v488_v40 = vld [vmem:[#allocation2 + $0xa0] sm:$0xff]  ;;  %v489_v42 = vld [vmem:[#allocation2 + $0xa8] sm:$0xff]  ;;  %v3777_v44 = vcombine.low %v493_v33, %v497_v34  ;;  %v511_v19 = vld [vmem:[#allocation2 + $0x158] sm:$0xff]  ;;  %v3803_v21 = vcombine.low %v518_v7, %v522_v9  ;;  %v3805_v22 = vcombine.low %v519_v10, %v523_v11  ;;  %v3796_v23 = vcombine.high %v510_v16, %v514_v18  ;;  %p4795_p8 = pneg %p4794_p7 }
  0x42   : > { %v3768_v45 = vcombine.high %v484_v39, %v488_v40  ;;  %v3770_v46 = vcombine.high %v485_v41, %v489_v42  ;;  %v476_v47 = vld [vmem:[#allocation2 + $0x40] sm:$0xff]  ;;  %v477_v49 = vld [vmem:[#allocation2 + $0x48] sm:$0xff]  ;;  %v3767_v51 = vcombine.low %v484_v39, %v488_v40  ;;  %v3769_v52 = vcombine.low %v485_v41, %v489_v42  ;;  %v515_v20 = vld [vmem:[#allocation2 + $0x178] sm:$0xff]  ;;  %p4801_p1 = por %p4800_p0, %p4799_p11 }
  0x43   : > { %899 = vmatpush1.bf16.msra.mxu0 %v3791_v27  ;;  %940 = vmatpush1.bf16.msra.mxu1 %v3793_v28  ;;  %v480_v48 = vld [vmem:[#allocation2 + $0x60] sm:$0xff]  ;;  %v481_v50 = vld [vmem:[#allocation2 + $0x68] sm:$0xff]  ;;  %v502_v24 = vld [vmem:[#allocation2 + $0x110] sm:$0xff]  ;;  %v3798_v25 = vcombine.high %v511_v19, %v515_v20 }
  0x44   : > { %900 = vmatprep.subr.bf16.mxu0 %v3784_v29  ;;  %941 = vmatprep.subr.bf16.mxu1 %v3786_v30  ;;  %v3760_v53 = vcombine.high %v476_v47, %v480_v48  ;;  %v468_v54 = vld [vmem:[#allocation2] sm:$0xff]  ;;  %v3762_v55 = vcombine.high %v477_v49, %v481_v50  ;;  %v469_v57 = vld [vmem:[#allocation2 + $0x8] sm:$0xff]  ;;  %v3759_v59 = vcombine.low %v476_v47, %v480_v48  ;;  %v506_v26 = vld [vmem:[#allocation2 + $0x130] sm:$0xff]  ;;  %p4802_p3 = pnand %p4801_p1, %p4795_p8 }
  0x45   : > { %v472_v56 = vld [vmem:[#allocation2 + $0x20] sm:$0xff]  ;;  %v473_v58 = vld [vmem:[#allocation2 + $0x28] sm:$0xff]  ;;  %v3761_v60 = vcombine.low %v477_v49, %v481_v50  ;;  %v503_v27 = vld [vmem:[#allocation2 + $0x118] sm:$0xff]  ;;  %v3795_v29 = vcombine.low %v510_v16, %v514_v18  ;;  %v3797_v30 = vcombine.low %v511_v19, %v515_v20  ;;  %v3788_v31 = vcombine.high %v502_v24, %v506_v26 }
  0x46   : > { %v3752_v61 = vcombine.high %v468_v54, %v472_v56  ;;  %v3754_v63 = vcombine.high %v469_v57, %v473_v58  ;;  %v3751_v4 = vcombine.low %v468_v54, %v472_v56  ;;  %v3753_v5 = vcombine.low %v469_v57, %v473_v58  ;;  %v5040_v12 = vld [vmem:[%s465_s19] sm:$0xf]  ;;  %v507_v28 = vld [vmem:[#allocation2 + $0x138] sm:$0xff]  ;;  %v494_v32 = vld [vmem:[#allocation2 + $0xd0] sm:$0xff]  ;;  %s3647_s19 = scalar_lea.sflag [#allocation4], %s459_s16 }
  0x47   : > { %901 = vmatpush1.bf16.msra.mxu0 %v3783_v35  ;;  %942 = vmatpush1.bf16.msra.mxu1 %v3785_v36  ;;  %v3790_v33 = vcombine.high %v503_v27, %v507_v28  ;;  %v498_v34 = vld [vmem:[#allocation2 + $0xf0] sm:$0xff]  ;;  %v495_v35 = vld [vmem:[#allocation2 + $0xd8] sm:$0xff] }
  0x48   : > { %902 = vmatprep.subr.bf16.mxu0 %v3776_v37  ;;  %943 = vmatprep.subr.bf16.mxu1 %v3778_v38  ;;  %v499_v36 = vld [vmem:[#allocation2 + $0xf8] sm:$0xff]  ;;  %v3787_v37 = vcombine.low %v502_v24, %v506_v26  ;;  %v3789_v38 = vcombine.low %v503_v27, %v507_v28  ;;  %v3780_v39 = vcombine.high %v494_v32, %v498_v34  ;;  %v486_v40 = vld [vmem:[#allocation2 + $0x90] sm:$0xff] }
  0x49   : > { %v490_v41 = vld [vmem:[#allocation2 + $0xb0] sm:$0xff]  ;;  %v487_v42 = vld [vmem:[#allocation2 + $0x98] sm:$0xff] }
  0x4a   : > { %v478_v47 = vld [vmem:[#allocation2 + $0x50] sm:$0xff]  ;;  %v479_v50 = vld [vmem:[#allocation2 + $0x58] sm:$0xff] }
  0x4b   : > { %903 = vmatpush1.bf16.msra.mxu0 %v3775_v43  ;;  %944 = vmatpush1.bf16.msra.mxu1 %v3777_v44  ;;  %v491_v43 = vld [vmem:[#allocation2 + $0xb8] sm:$0xff]  ;;  %v3779_v44 = vcombine.low %v494_v32, %v498_v34  ;;  %v482_v49 = vld [vmem:[#allocation2 + $0x70] sm:$0xff] }
  0x4c   : > { %904 = vmatprep.subr.bf16.mxu0 %v3768_v45  ;;  %945 = vmatprep.subr.bf16.mxu1 %v3770_v46  ;;  %v3781_v45 = vcombine.low %v495_v35, %v499_v36  ;;  %v3772_v46 = vcombine.high %v486_v40, %v490_v41  ;;  %v3774_v48 = vcombine.high %v487_v42, %v491_v43  ;;  %v474_v54 = vld [vmem:[#allocation2 + $0x30] sm:$0xff]  ;;  %v471_v57 = vld [vmem:[#allocation2 + $0x18] sm:$0xff] }
  0x4d   : > { %v3764_v56 = vcombine.high %v478_v47, %v482_v49  ;;  %v475_v58 = vld [vmem:[#allocation2 + $0x38] sm:$0xff]  ;;  %v4286_v1 = vld [vmem:[#allocation5 + $0xe4] ss:$16 sps:$4 sm:$0xff]   ;;  %v4290_v9 = vld [vmem:[#allocation5 + $0xc0] ss:$16 sps:$4 sm:$0xff]  }
  0x4e   : > { %v4289_v3 = vld [vmem:[#allocation5 + $0x2e4] ss:$16 sps:$4 sm:$0xff]   ;;  %v4293_v10 = vld [vmem:[#allocation5 + $0x2c0] ss:$16 sps:$4 sm:$0xff]  }
  0x4f   : > { %905 = vmatpush1.bf16.msra.mxu0 %v3767_v51  ;;  %946 = vmatpush1.bf16.msra.mxu1 %v3769_v52  ;;  %v483_v51 = vld [vmem:[#allocation2 + $0x78] sm:$0xff]  ;;  %v3771_v52 = vcombine.low %v486_v40, %v490_v41  ;;  %v4292_v7 = vld [vmem:[#allocation5 + $0xc4] ss:$16 sps:$4 sm:$0xff]   ;;  %v4302_v18 = vld [vmem:[#allocation5 + $0x80] ss:$16 sps:$4 sm:$0xff]  }
  0x50   : > { %906 = vmatprep.subr.bf16.mxu0 %v3760_v53  ;;  %947 = vmatprep.subr.bf16.mxu1 %v3762_v55  ;;  %v470_v53 = vld [vmem:[#allocation2 + $0x10] sm:$0xff]  ;;  %v3773_v55 = vcombine.low %v487_v42, %v491_v43 }
  0x51   : > { %v3756_v62 = vcombine.high %v470_v53, %v474_v54  ;;  %v3755_v2 = vcombine.low %v470_v53, %v474_v54  ;;  %v4298_v11 = vld [vmem:[#allocation5 + $0xa4] ss:$16 sps:$4 sm:$0xff]   ;;  %v4305_v19 = vld [vmem:[#allocation5 + $0x280] ss:$16 sps:$4 sm:$0xff]  }
  0x52   : > { %v4304_v16 = vld [vmem:[#allocation5 + $0x84] ss:$16 sps:$4 sm:$0xff]   ;;  %v4317_v26 = vld [vmem:[#allocation5 + $0x240] ss:$16 sps:$4 sm:$0xff]  }
  0x53   : > { %907 = vmatpush1.bf16.msra.mxu0 %v3759_v59  ;;  %948 = vmatpush1.bf16.msra.mxu1 %v3761_v60  ;;  %v3766_v59 = vcombine.high %v479_v50, %v483_v51  ;;  %v3763_v60 = vcombine.low %v478_v47, %v482_v49  ;;  %v4310_v20 = vld [vmem:[#allocation5 + $0x64] ss:$16 sps:$4 sm:$0xff]   ;;  %v4329_v34 = vld [vmem:[#allocation5 + $0x200] ss:$16 sps:$4 sm:$0xff]  }
  0x54   : > { %908 = vmatprep.subr.bf16.mxu0 %v3752_v61  ;;  %949 = vmatprep.subr.bf16.mxu1 %v3754_v63  ;;  %v3765_v61 = vcombine.low %v479_v50, %v483_v51  ;;  %v3758_v63 = vcombine.high %v471_v57, %v475_v58  ;;  %v4319_v24 = vld [vmem:[#allocation5 + $0x244] ss:$16 sps:$4 sm:$0xff]   ;;  %v4341_v41 = vld [vmem:[#allocation5 + $0x3c0] ss:$16 sps:$4 sm:$0xff]  }
  0x55   : > { %v4322_v27 = vld [vmem:[#allocation5 + $0x24] ss:$16 sps:$4 sm:$0xff]   ;;  %v4353_v49 = vld [vmem:[#allocation5 + $0x380] ss:$16 sps:$4 sm:$0xff]  }
  0x56   : > { %v4325_v28 = vld [vmem:[#allocation5 + $0x224] ss:$16 sps:$4 sm:$0xff]   ;;  %v4356_v51 = vld [vmem:[#allocation5 + $0x160] ss:$16 sps:$4 sm:$0xff]  }
  0x57   : > { %909 = vmatpush1.bf16.msra.mxu0 %v3751_v4  ;;  %950 = vmatpush1.bf16.msra.mxu1 %v3753_v5  ;;  %v3757_v4 = vcombine.low %v471_v57, %v475_v58  ;;  %v4284_v5 = vld [vmem:[#allocation5 + $0xe0] ss:$16 sps:$4 sm:$0xff]   ;;  %v4331_v32 = vld [vmem:[#allocation5 + $0x204] ss:$16 sps:$4 sm:$0xff]  }
  0x58   : > { %976 = vmatprep.subr.bf16.mxu0 %v3812_v6  ;;  %1017 = vmatprep.subr.bf16.mxu1 %v3814_v8  ;;  %v4287_v6 = vld [vmem:[#allocation5 + $0x2e0] ss:$16 sps:$4 sm:$0xff]   ;;  %v4295_v8 = vld [vmem:[#allocation5 + $0x2c4] ss:$16 sps:$4 sm:$0xff]  }
  0x59   : > { %v4343_v40 = vld [vmem:[#allocation5 + $0x3c4] ss:$16 sps:$4 sm:$0xff]   ;;  %v4359_v53 = vld [vmem:[#allocation5 + $0x360] ss:$16 sps:$4 sm:$0xff]  }
  0x5a   : > { %927 = vmatmul.mubr.bf16.vlgmr.msra.gmra.mxu0 %v5040_v12  ;;  %968 = vmatmul.mubr.bf16.vlgmr.msra.gmra.mxu1 %v5040_v12  ;;  %v4346_v42 = vld [vmem:[#allocation5 + $0x1a4] ss:$16 sps:$4 sm:$0xff]   ;;  %v4365_v57 = vld [vmem:[#allocation5 + $0x340] ss:$16 sps:$4 sm:$0xff]  }
  0x5b   : > { %977 = vmatpush1.bf16.msra.mxu0 %v3811_v13  ;;  %1018 = vmatpush1.bf16.msra.mxu1 %v3813_v14  ;;  %v4301_v13 = vld [vmem:[#allocation5 + $0x2a4] ss:$16 sps:$4 sm:$0xff]   ;;  %v4296_v14 = vld [vmem:[#allocation5 + $0xa0] ss:$16 sps:$4 sm:$0xff]  }
  0x5c   : > { %978 = vmatprep.subr.bf16.mxu0 %v3804_v15  ;;  %1019 = vmatprep.subr.bf16.mxu1 %v3806_v17  ;;  %v4299_v15 = vld [vmem:[#allocation5 + $0x2a0] ss:$16 sps:$4 sm:$0xff]   ;;  %v4307_v17 = vld [vmem:[#allocation5 + $0x284] ss:$16 sps:$4 sm:$0xff]  }
  0x5d   : > { %1008 = vmatprep.mubr.bf16.mxu0 %v4868_v0  ;;  %1049 = vmatprep.mubr.bf16.mxu1 %v4868_v0  ;;  %v3782_v0 = vcombine.high %v495_v35, %v499_v36  ;;  %v4334_v35 = vld [vmem:[#allocation5 + $0x1e4] ss:$16 sps:$4 sm:$0xff]  }
  0x5e   : > { %v4337_v36 = vld [vmem:[#allocation5 + $0x3e4] ss:$16 sps:$4 sm:$0xff]  }
  0x5f   : > { %979 = vmatpush1.bf16.msra.mxu0 %v3803_v21  ;;  %1020 = vmatpush1.bf16.msra.mxu1 %v3805_v22  ;;  %v4313_v21 = vld [vmem:[#allocation5 + $0x264] ss:$16 sps:$4 sm:$0xff]   ;;  %v4311_v22 = vld [vmem:[#allocation5 + $0x260] ss:$16 sps:$4 sm:$0xff]  }
  0x60   : > { %980 = vmatprep.subr.bf16.mxu0 %v3796_v23  ;;  %1021 = vmatprep.subr.bf16.mxu1 %v3798_v25  ;;  %v4316_v23 = vld [vmem:[#allocation5 + $0x44] ss:$16 sps:$4 sm:$0xff]   ;;  %v4314_v25 = vld [vmem:[#allocation5 + $0x40] ss:$16 sps:$4 sm:$0xff]  }
  0x61   : > { %v4349_v43 = vld [vmem:[#allocation5 + $0x3a4] ss:$16 sps:$4 sm:$0xff]  }
  0x62   : > { %v4355_v47 = vld [vmem:[#allocation5 + $0x384] ss:$16 sps:$4 sm:$0xff]  }
  0x63   : > { %981 = vmatpush1.bf16.msra.mxu0 %v3795_v29  ;;  %1022 = vmatpush1.bf16.msra.mxu1 %v3797_v30  ;;  %v4320_v29 = vld [vmem:[#allocation5 + $0x20] ss:$16 sps:$4 sm:$0xff]   ;;  %v4358_v50 = vld [vmem:[#allocation5 + $0x164] ss:$16 sps:$4 sm:$0xff]  }
  0x64   : > { %982 = vmatprep.subr.bf16.mxu0 %v3788_v31  ;;  %1023 = vmatprep.subr.bf16.mxu1 %v3790_v33  ;;  %v4323_v30 = vld [vmem:[#allocation5 + $0x220] ss:$16 sps:$4 sm:$0xff]   ;;  %v4328_v31 = vld [vmem:[#allocation5 + $0x4] ss:$16 sps:$4 sm:$0xff]  }
  0x65   : > { %v4326_v33 = vld [vmem:[#allocation5] ss:$16 sps:$4 sm:$0xff]   ;;  %v4364_v54 = vld [vmem:[#allocation5 + $0x144] ss:$16 sps:$4 sm:$0xff]  }
  0x66   : > { %v4370_v58 = vld [vmem:[#allocation5 + $0x124] ss:$16 sps:$4 sm:$0xff]  }
  0x67   : > { %983 = vmatpush1.bf16.msra.mxu0 %v3787_v37  ;;  %1024 = vmatpush1.bf16.msra.mxu1 %v3789_v38  ;;  %v4332_v37 = vld [vmem:[#allocation5 + $0x1e0] ss:$16 sps:$4 sm:$0xff]  }
  0x68   : > { %984 = vmatprep.subr.bf16.mxu0 %v3780_v39  ;;  %1025 = vmatprep.subr.bf16.mxu1 %v3782_v0  ;;  %v4335_v38 = vld [vmem:[#allocation5 + $0x3e0] ss:$16 sps:$4 sm:$0xff]   ;;  %v4340_v39 = vld [vmem:[#allocation5 + $0x1c4] ss:$16 sps:$4 sm:$0xff]  }
  0x69   : > { %v4338_v0 = vld [vmem:[#allocation5 + $0x1c0] ss:$16 sps:$4 sm:$0xff]  }
  0x6b   : > { %985 = vmatpush1.bf16.msra.mxu0 %v3779_v44  ;;  %1026 = vmatpush1.bf16.msra.mxu1 %v3781_v45  ;;  %v4344_v44 = vld [vmem:[#allocation5 + $0x1a0] ss:$16 sps:$4 sm:$0xff]  }
  0x6c   : > { %986 = vmatprep.subr.bf16.mxu0 %v3772_v46  ;;  %1027 = vmatprep.subr.bf16.mxu1 %v3774_v48  ;;  %v4347_v45 = vld [vmem:[#allocation5 + $0x3a0] ss:$16 sps:$4 sm:$0xff]   ;;  %v4352_v46 = vld [vmem:[#allocation5 + $0x184] ss:$16 sps:$4 sm:$0xff]  }
  0x6d   : > { %v4350_v48 = vld [vmem:[#allocation5 + $0x180] ss:$16 sps:$4 sm:$0xff]  }
  0x6f   : > { %987 = vmatpush1.bf16.msra.mxu0 %v3771_v52  ;;  %1028 = vmatpush1.bf16.msra.mxu1 %v3773_v55  ;;  %v4361_v52 = vld [vmem:[#allocation5 + $0x364] ss:$16 sps:$4 sm:$0xff]  }
  0x70   : > { %988 = vmatprep.subr.bf16.mxu0 %v3764_v56  ;;  %1029 = vmatprep.subr.bf16.mxu1 %v3766_v59  ;;  %v4367_v55 = vld [vmem:[#allocation5 + $0x344] ss:$16 sps:$4 sm:$0xff]   ;;  %v4362_v56 = vld [vmem:[#allocation5 + $0x140] ss:$16 sps:$4 sm:$0xff]  }
  0x71   : > { %v4373_v59 = vld [vmem:[#allocation5 + $0x324] ss:$16 sps:$4 sm:$0xff]  }
  0x73   : > { %989 = vmatpush1.bf16.msra.mxu0 %v3763_v60  ;;  %1030 = vmatpush1.bf16.msra.mxu1 %v3765_v61  ;;  %v4368_v60 = vld [vmem:[#allocation5 + $0x120] ss:$16 sps:$4 sm:$0xff]  }
  0x74   : > { %990 = vmatprep.subr.bf16.mxu0 %v3756_v62  ;;  %1031 = vmatprep.subr.bf16.mxu1 %v3758_v63  ;;  %v4371_v61 = vld [vmem:[#allocation5 + $0x320] ss:$16 sps:$4 sm:$0xff]   ;;  %v4376_v62 = vld [vmem:[#allocation5 + $0x104] ss:$16 sps:$4 sm:$0xff]  }
  0x75   : > { %v4379_v63 = vld [vmem:[#allocation5 + $0x304] ss:$16 sps:$4 sm:$0xff]  }
  0x77   : > { %991 = vmatpush1.bf16.msra.mxu0 %v3755_v2  ;;  %1032 = vmatpush1.bf16.msra.mxu1 %v3757_v4  ;;  %v4377_v2 = vld [vmem:[#allocation5 + $0x300] ss:$16 sps:$4 sm:$0xff]   ;;  %v4385_v4 = vld [vmem:[#allocation5 + $0x6e4] ss:$16 sps:$4 sm:$0xff]  }
  0x78   : > { %2632 = vmatprep.subr.bf16.mxu0 %v4286_v1  ;;  %2673 = vmatprep.subr.bf16.mxu1 %v4289_v3  ;;  %v4374_v1 = vld [vmem:[#allocation5 + $0x100] ss:$16 sps:$4 sm:$0xff]   ;;  %v4382_v3 = vld [vmem:[#allocation5 + $0x4e4] ss:$16 sps:$4 sm:$0xff]  }
  0x7a   : > { %1009 = vmatmul.mubr.bf16.vlgmr.msra.gmra.mxu0 %v5040_v12  ;;  %1050 = vmatmul.mubr.bf16.vlgmr.msra.gmra.mxu1 %v5040_v12  ;;  %v4308_v12 = vld [vmem:[#allocation5 + $0x60] ss:$16 sps:$4 sm:$0xff]  }
  0x7b   : > { %2633 = vmatpush1.bf16.msra.mxu0 %v4284_v5  ;;  %2674 = vmatpush1.bf16.msra.mxu1 %v4287_v6  ;;  %v534_v5 = vlaneseq }
  0x7c   : > { %2634 = vmatprep.subr.bf16.mxu0 %v4292_v7  ;;  %2675 = vmatprep.subr.bf16.mxu1 %v4295_v8  ;;  %v5054_v8 = vld [vmem:[%s5351_s2] sm:$0xff] }
  0x7d   : > { %v5048_v6 = vshrl.u32 %v534_v5, 7 }
  0x7f   : > { %2635 = vmatpush1.bf16.msra.mxu0 %v4290_v9  ;;  %2676 = vmatpush1.bf16.msra.mxu1 %v4293_v10  ;;  %v536_v7 = vsub.s32 0, %v5048_v6  ;;  %v544_v9 = vsub.s32 2, %v5048_v6  ;;  %v540_v10 = vsub.s32 1, %v5048_v6 }
  0x80   : > { %2636 = vmatprep.subr.bf16.mxu0 %v4298_v11  ;;  %2677 = vmatprep.subr.bf16.mxu1 %v4301_v13  ;;  %v548_v11 = vsub.s32 3, %v5048_v6 }
  0x81   : > { %v537_v13 = vrot.slane %v5054_v8, %v536_v7 }
  0x83   : > { %2637 = vmatpush1.bf16.msra.mxu0 %v4296_v14  ;;  %2678 = vmatpush1.bf16.msra.mxu1 %v4299_v15  ;;  %v545_v14 = vrot.slane %v5054_v8, %v544_v9  ;;  %v541_v15 = vrot.slane %v5054_v8, %v540_v10 }
  0x84   : > { %2638 = vmatprep.subr.bf16.mxu0 %v4304_v16  ;;  %2679 = vmatprep.subr.bf16.mxu1 %v4307_v17  ;;  %v549_v17 = vrot.slane %v5054_v8, %v548_v11 }
  0x87   : > { %2639 = vmatpush1.bf16.msra.mxu0 %v4302_v18  ;;  %2680 = vmatpush1.bf16.msra.mxu1 %v4305_v19 }
  0x88   : > { %2640 = vmatprep.subr.bf16.mxu0 %v4310_v20  ;;  %2681 = vmatprep.subr.bf16.mxu1 %v4313_v21 }
  0x8b   : > { %2641 = vmatpush1.bf16.msra.mxu0 %v4308_v12  ;;  %2682 = vmatpush1.bf16.msra.mxu1 %v4311_v22 }
  0x8c   : > { %2642 = vmatprep.subr.bf16.mxu0 %v4316_v23  ;;  %2683 = vmatprep.subr.bf16.mxu1 %v4319_v24 }
  0x8f   : > { %2643 = vmatpush1.bf16.msra.mxu0 %v4314_v25  ;;  %2684 = vmatpush1.bf16.msra.mxu1 %v4317_v26 }
  0x90   : > { %2644 = vmatprep.subr.bf16.mxu0 %v4322_v27  ;;  %2685 = vmatprep.subr.bf16.mxu1 %v4325_v28 }
  0x93   : > { %2645 = vmatpush1.bf16.msra.mxu0 %v4320_v29  ;;  %2686 = vmatpush1.bf16.msra.mxu1 %v4323_v30 }
  0x94   : > { %2646 = vmatprep.subr.bf16.mxu0 %v4328_v31  ;;  %2687 = vmatprep.subr.bf16.mxu1 %v4331_v32 }
  0x97   : > { %2647 = vmatpush1.bf16.msra.mxu0 %v4326_v33  ;;  %2688 = vmatpush1.bf16.msra.mxu1 %v4329_v34  ;;  %v4380_v34 = vld [vmem:[#allocation5 + $0x4e0] ss:$16 sps:$4 sm:$0xff]  }
  0x98   : > { %2648 = vmatprep.subr.bf16.mxu0 %v4334_v35  ;;  %2689 = vmatprep.subr.bf16.mxu1 %v4337_v36  ;;  %v4383_v36 = vld [vmem:[#allocation5 + $0x6e0] ss:$16 sps:$4 sm:$0xff]  }
  0x9b   : > { %2649 = vmatpush2.bf16.msra.mxu0 %v4332_v37  ;;  %2690 = vmatpush2.bf16.msra.mxu1 %v4335_v38  ;;  %v4388_v37 = vld [vmem:[#allocation5 + $0x4c4] ss:$16 sps:$4 sm:$0xff]  }
  0x9c   : > { %2650 = vmatprep.subr.bf16.mxu0 %v4340_v39  ;;  %2691 = vmatprep.subr.bf16.mxu1 %v4343_v40  ;;  %v4391_v39 = vld [vmem:[#allocation5 + $0x6c4] ss:$16 sps:$4 sm:$0xff]   ;;  %v4386_v40 = vld [vmem:[#allocation5 + $0x4c0] ss:$16 sps:$4 sm:$0xff]  }
  0x9f   : > { %2651 = vmatpush2.bf16.msra.mxu0 %v4338_v0  ;;  %2692 = vmatpush2.bf16.msra.mxu1 %v4341_v41  ;;  %v4389_v0 = vld [vmem:[#allocation5 + $0x6c0] ss:$16 sps:$4 sm:$0xff]   ;;  %v4394_v41 = vld [vmem:[#allocation5 + $0x4a4] ss:$16 sps:$4 sm:$0xff]  }
  0xa0   : > { %2652 = vmatprep.subr.bf16.mxu0 %v4346_v42  ;;  %2693 = vmatprep.subr.bf16.mxu1 %v4349_v43  ;;  %v4397_v42 = vld [vmem:[#allocation5 + $0x6a4] ss:$16 sps:$4 sm:$0xff]   ;;  %v556_v43 = vsub.s32 5, %v5048_v6 }
  0xa3   : > { %2653 = vmatpush2.bf16.msra.mxu0 %v4344_v44  ;;  %2694 = vmatpush2.bf16.msra.mxu1 %v4347_v45  ;;  %v4392_v44 = vld [vmem:[#allocation5 + $0x4a0] ss:$16 sps:$4 sm:$0xff]   ;;  %v564_v45 = vsub.s32 7, %v5048_v6 }
  0xa4   : > { %2654 = vmatprep.subr.bf16.mxu0 %v4352_v46  ;;  %2695 = vmatprep.subr.bf16.mxu1 %v4355_v47  ;;  %v4395_v46 = vld [vmem:[#allocation5 + $0x6a0] ss:$16 sps:$4 sm:$0xff]   ;;  %v4400_v47 = vld [vmem:[#allocation5 + $0x484] ss:$16 sps:$4 sm:$0xff]  }
  0xa7   : > { %2655 = vmatpush2.bf16.msra.mxu0 %v4350_v48  ;;  %2696 = vmatpush2.bf16.msra.mxu1 %v4353_v49  ;;  %v4403_v48 = vld [vmem:[#allocation5 + $0x684] ss:$16 sps:$4 sm:$0xff]   ;;  %v557_v49 = vrot.slane %v5054_v8, %v556_v43  ;;  %v4440_v43 = vld [vmem:[#allocation5 + $0x5a0] ss:$16 sps:$4 sm:$0xff]  }
  0xa8   : > { %2656 = vmatprep.subr.bf16.mxu0 %v4358_v50  ;;  %2697 = vmatprep.subr.bf16.mxu1 %v4361_v52  ;;  %v4398_v50 = vld [vmem:[#allocation5 + $0x480] ss:$16 sps:$4 sm:$0xff]   ;;  %v565_v52 = vrot.slane %v5054_v8, %v564_v45  ;;  %v4448_v45 = vld [vmem:[#allocation5 + $0x584] ss:$16 sps:$4 sm:$0xff]  }
  0xab   : > { %2657 = vmatpush2.bf16.msra.mxu0 %v4356_v51  ;;  %2698 = vmatpush2.bf16.msra.mxu1 %v4359_v53  ;;  %v4401_v53 = vld [vmem:[#allocation5 + $0x680] ss:$16 sps:$4 sm:$0xff]  }
  0xac   : > { %2658 = vmatprep.subr.bf16.mxu0 %v4364_v54  ;;  %2699 = vmatprep.subr.bf16.mxu1 %v4367_v55  ;;  %v4406_v54 = vld [vmem:[#allocation5 + $0x464] ss:$16 sps:$4 sm:$0xff]  }
  0xaf   : > { %2659 = vmatpush2.bf16.msra.mxu0 %v4362_v56  ;;  %2700 = vmatpush2.bf16.msra.mxu1 %v4365_v57  ;;  %v4409_v56 = vld [vmem:[#allocation5 + $0x664] ss:$16 sps:$4 sm:$0xff]  }
  0xb0   : > { %2660 = vmatprep.subr.bf16.mxu0 %v4370_v58  ;;  %2701 = vmatprep.subr.bf16.mxu1 %v4373_v59 }
  0xb3   : > { %2661 = vmatpush2.bf16.msra.mxu0 %v4368_v60  ;;  %2702 = vmatpush2.bf16.msra.mxu1 %v4371_v61  ;;  %v4404_v60 = vld [vmem:[#allocation5 + $0x460] ss:$16 sps:$4 sm:$0xff]  }
  0xb4   : > { %2662 = vmatprep.subr.bf16.mxu0 %v4376_v62  ;;  %2703 = vmatprep.subr.bf16.mxu1 %v4379_v63  ;;  %v4407_v63 = vld [vmem:[#allocation5 + $0x660] ss:$16 sps:$4 sm:$0xff]  }
  0xb7   : > { %2663 = vmatpush2.bf16.msra.mxu0 %v4374_v1  ;;  %2704 = vmatpush2.bf16.msra.mxu1 %v4377_v2  ;;  %v4412_v1 = vld [vmem:[#allocation5 + $0x444] ss:$16 sps:$4 sm:$0xff]  }
  0xb8   : > { %2714 = vmatprep.subr.bf16.mxu0 %v4382_v3  ;;  %2755 = vmatprep.subr.bf16.mxu1 %v4385_v4  ;;  %v4415_v4 = vld [vmem:[#allocation5 + $0x644] ss:$16 sps:$4 sm:$0xff]  }
 0x11a   : > { %v928_v16 = vpop.f32.mrf.mxu0  ;;  %v969_v19 = vpop.f32.mrf.mxu1 }
 0x11b   : > { %v929_v18 = vadd.f32 %v928_v16, %v537_v13  ;;  %v970_v20 = vadd.f32 %v969_v19, %v545_v14  ;;  %v4413_v16 = vld [vmem:[#allocation5 + $0x640] ss:$16 sps:$4 sm:$0xff]  }
 0x11c   : > { %v930_v21 = vpop.f32.mrf.mxu0  ;;  %v971_v23 = vpop.f32.mrf.mxu1  ;;  %v4416_v19 = vld [vmem:[#allocation5 + $0x420] ss:$16 sps:$4 sm:$0xff]  }
 0x11d   : > { %v1058_v12 = vpack.c.bf16 %v929_v18, %v929_v18  ;;  %v931_v22 = vadd.f32 %v930_v21, %v541_v15  ;;  %v1060_v24 = vpack.c.bf16 %v970_v20, %v970_v20  ;;  %v972_v25 = vadd.f32 %v971_v23, %v549_v17  ;;  %v4410_v15 = vld [vmem:[#allocation5 + $0x440] ss:$16 sps:$4 sm:$0xff]   ;;  %v4418_v17 = vld [vmem:[#allocation5 + $0x424] ss:$16 sps:$4 sm:$0xff]  }
 0x11e   : > { %v932_v26 = vpop.f32.mrf.mxu0  ;;  %v973_v28 = vpop.f32.mrf.mxu1  ;;  %v4421_v18 = vld [vmem:[#allocation5 + $0x624] ss:$16 sps:$4 sm:$0xff]   ;;  %v4419_v20 = vld [vmem:[#allocation5 + $0x620] ss:$16 sps:$4 sm:$0xff]  }
 0x11f   : > { %4700 = vtanh.bf16 %v1058_v12  ;;  %v1059_v27 = vpack.c.bf16 %v931_v22, %v931_v22  ;;  %v1061_v29 = vpack.c.bf16 %v972_v25, %v972_v25  ;;  %v4424_v21 = vld [vmem:[#allocation5 + $0x404] ss:$16 sps:$4 sm:$0xff]   ;;  %v4422_v22 = vld [vmem:[#allocation5 + $0x400] ss:$16 sps:$4 sm:$0xff]  }
 0x120   : > { %4702 = vtanh.bf16 %v1060_v24  ;;  %v933_v30 = vpop.f32.mrf.mxu0  ;;  %v974_v31 = vpop.f32.mrf.mxu1  ;;  %v4427_v12 = vld [vmem:[#allocation5 + $0x604] ss:$16 sps:$4 sm:$0xff]   ;;  %v4425_v23 = vld [vmem:[#allocation5 + $0x600] ss:$16 sps:$4 sm:$0xff]  }
 0x121   : > { %4704 = vtanh.bf16 %v1059_v27  ;;  %v4430_v24 = vld [vmem:[#allocation5 + $0x5e4] ss:$16 sps:$4 sm:$0xff]   ;;  %v4428_v26 = vld [vmem:[#allocation5 + $0x5e0] ss:$16 sps:$4 sm:$0xff]  }
 0x122   : > { %4706 = vtanh.bf16 %v1061_v29  ;;  %v4433_v25 = vld [vmem:[#allocation5 + $0x7e4] ss:$16 sps:$4 sm:$0xff]   ;;  %v4431_v28 = vld [vmem:[#allocation5 + $0x7e0] ss:$16 sps:$4 sm:$0xff]  }
 0x123   : > { %v4436_v29 = vld [vmem:[#allocation5 + $0x5c4] ss:$16 sps:$4 sm:$0xff]  }
 0x124   : > { %v4439_v31 = vld [vmem:[#allocation5 + $0x7c4] ss:$16 sps:$4 sm:$0xff]  }
 0x12d   : > { %v5071_v32 = vpop.eup %4700 }
 0x12e   : > { %v5073_v33 = vpop.eup %4702 }
 0x12f   : > { %v5075_v35 = vpop.eup %4704 }
 0x130   : > { %v5077_v38 = vpop.eup %4706  ;;  %2664 = vmatprep.mubr.bf16.mxu0 %v5075_v35 }
 0x131   : > { %2705 = vmatprep.mubr.bf16.mxu1 %v5077_v38  ;;  %2665 = vmatmul.mubr.bf16.vlgmr.msra.gmra.mxu0 %v5071_v32 }
 0x132   : > { %2706 = vmatmul.mubr.bf16.vlgmr.msra.gmra.mxu1 %v5073_v33  ;;  %2715 = vmatpush1.bf16.msra.mxu0 %v4380_v34  ;;  %v560_v34 = vsub.s32 6, %v5048_v6 }
 0x133   : > { %2756 = vmatpush1.bf16.msra.mxu1 %v4383_v36  ;;  %2716 = vmatprep.subr.bf16.mxu0 %v4388_v37  ;;  %v552_v36 = vsub.s32 4, %v5048_v6  ;;  %v4434_v37 = vld [vmem:[#allocation5 + $0x5c0] ss:$16 sps:$4 sm:$0xff]  }
 0x134   : > { %2757 = vmatprep.subr.bf16.mxu1 %v4391_v39  ;;  %v4437_v39 = vld [vmem:[#allocation5 + $0x7c0] ss:$16 sps:$4 sm:$0xff]  }
 0x136   : > { %2717 = vmatpush1.bf16.msra.mxu0 %v4386_v40  ;;  %v4442_v40 = vld [vmem:[#allocation5 + $0x5a4] ss:$16 sps:$4 sm:$0xff]  }
 0x137   : > { %2758 = vmatpush1.bf16.msra.mxu1 %v4389_v0  ;;  %2718 = vmatprep.subr.bf16.mxu0 %v4394_v41  ;;  %v4445_v0 = vld [vmem:[#allocation5 + $0x7a4] ss:$16 sps:$4 sm:$0xff]   ;;  %v561_v41 = vrot.slane %v5054_v8, %v560_v34  ;;  %v4503_v34 = vld [vmem:[#allocation5 + $0x268] ss:$16 sps:$4 sm:$0xff]  }
 0x138   : > { %2759 = vmatprep.subr.bf16.mxu1 %v4397_v42  ;;  %v553_v42 = vrot.slane %v5054_v8, %v552_v36  ;;  %v4457_v8 = vld [vmem:[#allocation5 + $0x764] ss:$16 sps:$4 sm:$0xff]   ;;  %v4508_v36 = vld [vmem:[#allocation5 + $0x4c] ss:$16 sps:$4 sm:$0xff]  }
 0x13a   : > { %2719 = vmatpush1.bf16.msra.mxu0 %v4392_v44  ;;  %v5086_v51 = vpop.f32.mrf.mxu0  ;;  %v5089_v55 = vpop.f32.mrf.mxu1  ;;  %v4443_v44 = vld [vmem:[#allocation5 + $0x7a0] ss:$16 sps:$4 sm:$0xff]  }
 0x13b   : > { %2760 = vmatpush1.bf16.msra.mxu1 %v4395_v46  ;;  %2720 = vmatprep.subr.bf16.mxu0 %v4400_v47  ;;  %v4451_v46 = vld [vmem:[#allocation5 + $0x784] ss:$16 sps:$4 sm:$0xff]   ;;  %v1052_v47 = vadd.f32 %v5089_v55, %v561_v41  ;;  %v4517_v41 = vld [vmem:[#allocation5 + $0x22c] ss:$16 sps:$4 sm:$0xff]  }
 0x13c   : > { %2761 = vmatprep.subr.bf16.mxu1 %v4403_v48  ;;  %v1012_v57 = vpop.f32.mrf.mxu0  ;;  %v1053_v59 = vpop.f32.mrf.mxu1  ;;  %v1011_v48 = vadd.f32 %v5086_v51, %v553_v42  ;;  %v4463_v55 = vld [vmem:[#allocation5 + $0x744] ss:$16 sps:$4 sm:$0xff]   ;;  %v4458_v51 = vld [vmem:[#allocation5 + $0x540] ss:$16 sps:$4 sm:$0xff]   ;;  %v4512_v42 = vld [vmem:[#allocation5 + $0x28] ss:$16 sps:$4 sm:$0xff]  }
 0x13d   : > { %v1013_v58 = vadd.f32 %v1012_v57, %v557_v49  ;;  %v1054_v62 = vadd.f32 %v1053_v59, %v565_v52  ;;  %v4446_v49 = vld [vmem:[#allocation5 + $0x580] ss:$16 sps:$4 sm:$0xff]   ;;  %v4454_v52 = vld [vmem:[#allocation5 + $0x564] ss:$16 sps:$4 sm:$0xff]  }
 0x13e   : > { %2721 = vmatpush1.bf16.msra.mxu0 %v4398_v50  ;;  %v1014_v61 = vpop.f32.mrf.mxu0  ;;  %v1055_v3 = vpop.f32.mrf.mxu1  ;;  %v4449_v50 = vld [vmem:[#allocation5 + $0x780] ss:$16 sps:$4 sm:$0xff]  }
 0x13f   : > { %2762 = vmatpush1.bf16.msra.mxu1 %v4401_v53  ;;  %2722 = vmatprep.subr.bf16.mxu0 %v4406_v54  ;;  %v1063_v2 = vpack.c.bf16 %v1013_v58, %v1013_v58  ;;  %v1065_v5 = vpack.c.bf16 %v1054_v62, %v1054_v62  ;;  %v1064_v53 = vpack.c.bf16 %v1052_v47, %v1052_v47  ;;  %v4455_v57 = vld [vmem:[#allocation5 + $0x760] ss:$16 sps:$4 sm:$0xff]   ;;  %v4460_v58 = vld [vmem:[#allocation5 + $0x544] ss:$16 sps:$4 sm:$0xff]   ;;  %v4521_v47 = vld [vmem:[#allocation5 + $0x208] ss:$16 sps:$4 sm:$0xff]  }
 0x140   : > { %2763 = vmatprep.subr.bf16.mxu1 %v4409_v56  ;;  %v1015_v13 = vpop.f32.mrf.mxu0  ;;  %v1056_v14 = vpop.f32.mrf.mxu1  ;;  %v1062_v54 = vpack.c.bf16 %v1011_v48, %v1011_v48  ;;  %v4452_v56 = vld [vmem:[#allocation5 + $0x560] ss:$16 sps:$4 sm:$0xff]   ;;  %v4469_v61 = vld [vmem:[#allocation5 + $0x724] ss:$16 sps:$4 sm:$0xff]   ;;  %v4526_v48 = vld [vmem:[#allocation5 + $0x1ec] ss:$16 sps:$4 sm:$0xff]  }
 0x141   : > { %4708 = vtanh.bf16 %v1063_v2  ;;  %v4461_v59 = vld [vmem:[#allocation5 + $0x740] ss:$16 sps:$4 sm:$0xff]   ;;  %v4475_v2 = vld [vmem:[#allocation5 + $0x704] ss:$16 sps:$4 sm:$0xff]   ;;  %v4481_v13 = vld [vmem:[#allocation5 + $0x2ec] ss:$16 sps:$4 sm:$0xff]  }
 0x142   : > { %2723 = vmatpush1.bf16.msra.mxu0 %v4404_v60  ;;  %4710 = vtanh.bf16 %v1065_v5  ;;  %v4466_v60 = vld [vmem:[#allocation5 + $0x524] ss:$16 sps:$4 sm:$0xff]   ;;  %v4464_v62 = vld [vmem:[#allocation5 + $0x520] ss:$16 sps:$4 sm:$0xff]   ;;  %v4478_v5 = vld [vmem:[#allocation5 + $0xec] ss:$16 sps:$4 sm:$0xff]  }
 0x143   : > { %2764 = vmatpush1.bf16.msra.mxu1 %v4407_v63  ;;  %2724 = vmatprep.subr.bf16.mxu0 %v4412_v1  ;;  %4712 = vtanh.bf16 %v1064_v53  ;;  %v4467_v63 = vld [vmem:[#allocation5 + $0x720] ss:$16 sps:$4 sm:$0xff]   ;;  %v4472_v1 = vld [vmem:[#allocation5 + $0x504] ss:$16 sps:$4 sm:$0xff]   ;;  %v4476_v14 = vld [vmem:[#allocation5 + $0xe8] ss:$16 sps:$4 sm:$0xff]  }
 0x144   : > { %2765 = vmatprep.subr.bf16.mxu1 %v4415_v4  ;;  %4714 = vtanh.bf16 %v1062_v54  ;;  %v4470_v3 = vld [vmem:[#allocation5 + $0x500] ss:$16 sps:$4 sm:$0xff]   ;;  %v4535_v53 = vld [vmem:[#allocation5 + $0x3cc] ss:$16 sps:$4 sm:$0xff]   ;;  %v4530_v54 = vld [vmem:[#allocation5 + $0x1c8] ss:$16 sps:$4 sm:$0xff]  }
 0x145   : > { %v4473_v4 = vld [vmem:[#allocation5 + $0x700] ss:$16 sps:$4 sm:$0xff]  }
 0x146   : > { %2725 = vmatpush1.bf16.msra.mxu0 %v4410_v15 }
 0x147   : > { %2766 = vmatpush1.bf16.msra.mxu1 %v4413_v16  ;;  %2726 = vmatprep.subr.bf16.mxu0 %v4418_v17  ;;  %v4479_v16 = vld [vmem:[#allocation5 + $0x2e8] ss:$16 sps:$4 sm:$0xff]  }
 0x148   : > { %2767 = vmatprep.subr.bf16.mxu1 %v4421_v18  ;;  %v4484_v18 = vld [vmem:[#allocation5 + $0xcc] ss:$16 sps:$4 sm:$0xff]  }
 0x14a   : > { %2727 = vmatpush1.bf16.msra.mxu0 %v4416_v19  ;;  %v4487_v19 = vld [vmem:[#allocation5 + $0x2cc] ss:$16 sps:$4 sm:$0xff]  }
 0x14b   : > { %2768 = vmatpush1.bf16.msra.mxu1 %v4419_v20  ;;  %2728 = vmatprep.subr.bf16.mxu0 %v4424_v21  ;;  %v4482_v20 = vld [vmem:[#allocation5 + $0xc8] ss:$16 sps:$4 sm:$0xff]  }
 0x14c   : > { %2769 = vmatprep.subr.bf16.mxu1 %v4427_v12  ;;  %v4485_v21 = vld [vmem:[#allocation5 + $0x2c8] ss:$16 sps:$4 sm:$0xff]   ;;  %v4490_v12 = vld [vmem:[#allocation5 + $0xac] ss:$16 sps:$4 sm:$0xff]  }
 0x14e   : > { %2729 = vmatpush1.bf16.msra.mxu0 %v4422_v22  ;;  %v4493_v22 = vld [vmem:[#allocation5 + $0x2ac] ss:$16 sps:$4 sm:$0xff]  }
 0x14f   : > { %v5091_v27 = vpop.eup %4708  ;;  %2770 = vmatpush1.bf16.msra.mxu1 %v4425_v23  ;;  %2730 = vmatprep.subr.bf16.mxu0 %v4430_v24  ;;  %v4488_v23 = vld [vmem:[#allocation5 + $0xa8] ss:$16 sps:$4 sm:$0xff]  }
 0x150   : > { %v5093_v30 = vpop.eup %4710  ;;  %2771 = vmatprep.subr.bf16.mxu1 %v4433_v25  ;;  %2746 = vmatprep.mubr.bf16.mxu0 %v5091_v27  ;;  %v4491_v24 = vld [vmem:[#allocation5 + $0x2a8] ss:$16 sps:$4 sm:$0xff]   ;;  %v4496_v25 = vld [vmem:[#allocation5 + $0x8c] ss:$16 sps:$4 sm:$0xff]  }
 0x151   : > { %2787 = vmatprep.mubr.bf16.mxu1 %v5093_v30  ;;  %v5103_v15 = vpop.eup %4712 }
 0x152   : > { %2731 = vmatpush2.bf16.msra.mxu0 %v4428_v26  ;;  %v5105_v17 = vpop.eup %4714  ;;  %v4499_v26 = vld [vmem:[#allocation5 + $0x28c] ss:$16 sps:$4 sm:$0xff]  }
 0x153   : > { %2772 = vmatpush2.bf16.msra.mxu1 %v4431_v28  ;;  %2732 = vmatprep.subr.bf16.mxu0 %v4436_v29  ;;  %v4494_v28 = vld [vmem:[#allocation5 + $0x88] ss:$16 sps:$4 sm:$0xff]   ;;  %v4502_v29 = vld [vmem:[#allocation5 + $0x6c] ss:$16 sps:$4 sm:$0xff]  }
 0x154   : > { %2773 = vmatprep.subr.bf16.mxu1 %v4439_v31  ;;  %v4505_v31 = vld [vmem:[#allocation5 + $0x26c] ss:$16 sps:$4 sm:$0xff]  }
 0x156   : > { %2733 = vmatpush2.bf16.msra.mxu0 %v4434_v37  ;;  %v4511_v37 = vld [vmem:[#allocation5 + $0x24c] ss:$16 sps:$4 sm:$0xff]  }
 0x157   : > { %2774 = vmatpush2.bf16.msra.mxu1 %v4437_v39  ;;  %2734 = vmatprep.subr.bf16.mxu0 %v4442_v40  ;;  %v4506_v39 = vld [vmem:[#allocation5 + $0x48] ss:$16 sps:$4 sm:$0xff]  }
 0x158   : > { %2775 = vmatprep.subr.bf16.mxu1 %v4445_v0  ;;  %v4509_v40 = vld [vmem:[#allocation5 + $0x248] ss:$16 sps:$4 sm:$0xff]   ;;  %v4514_v0 = vld [vmem:[#allocation5 + $0x2c] ss:$16 sps:$4 sm:$0xff]  }
 0x15a   : > { %2735 = vmatpush2.bf16.msra.mxu0 %v4440_v43  ;;  %v4515_v43 = vld [vmem:[#allocation5 + $0x228] ss:$16 sps:$4 sm:$0xff]  }
 0x15b   : > { %2776 = vmatpush2.bf16.msra.mxu1 %v4443_v44  ;;  %2736 = vmatprep.subr.bf16.mxu0 %v4448_v45  ;;  %v4520_v44 = vld [vmem:[#allocation5 + $0xc] ss:$16 sps:$4 sm:$0xff]  }
 0x15c   : > { %2777 = vmatprep.subr.bf16.mxu1 %v4451_v46  ;;  %v4523_v45 = vld [vmem:[#allocation5 + $0x20c] ss:$16 sps:$4 sm:$0xff]   ;;  %v4518_v46 = vld [vmem:[#allocation5 + $0x8] ss:$16 sps:$4 sm:$0xff]  }
 0x15e   : > { %2737 = vmatpush2.bf16.msra.mxu0 %v4446_v49  ;;  %v4529_v49 = vld [vmem:[#allocation5 + $0x3ec] ss:$16 sps:$4 sm:$0xff]  }
 0x15f   : > { %2778 = vmatpush2.bf16.msra.mxu1 %v4449_v50  ;;  %2738 = vmatprep.subr.bf16.mxu0 %v4454_v52  ;;  %v4524_v50 = vld [vmem:[#allocation5 + $0x1e8] ss:$16 sps:$4 sm:$0xff]  }
 0x160   : > { %2779 = vmatprep.subr.bf16.mxu1 %v4457_v8  ;;  %v4527_v52 = vld [vmem:[#allocation5 + $0x3e8] ss:$16 sps:$4 sm:$0xff]   ;;  %v4532_v8 = vld [vmem:[#allocation5 + $0x1cc] ss:$16 sps:$4 sm:$0xff]  }
 0x162   : > { %2739 = vmatpush2.bf16.msra.mxu0 %v4452_v56  ;;  %v4533_v56 = vld [vmem:[#allocation5 + $0x3c8] ss:$16 sps:$4 sm:$0xff]  }
 0x163   : > { %2780 = vmatpush2.bf16.msra.mxu1 %v4455_v57  ;;  %2740 = vmatprep.subr.bf16.mxu0 %v4460_v58  ;;  %v4538_v57 = vld [vmem:[#allocation5 + $0x1ac] ss:$16 sps:$4 sm:$0xff]  }
 0x164   : > { %2781 = vmatprep.subr.bf16.mxu1 %v4463_v55  ;;  %v4541_v58 = vld [vmem:[#allocation5 + $0x3ac] ss:$16 sps:$4 sm:$0xff]   ;;  %v4536_v55 = vld [vmem:[#allocation5 + $0x1a8] ss:$16 sps:$4 sm:$0xff]  }
 0x166   : > { %2741 = vmatpush2.bf16.msra.mxu0 %v4458_v51  ;;  %v4539_v51 = vld [vmem:[#allocation5 + $0x3a8] ss:$16 sps:$4 sm:$0xff]  }
 0x167   : > { %2782 = vmatpush2.bf16.msra.mxu1 %v4461_v59  ;;  %2742 = vmatprep.subr.bf16.mxu0 %v4466_v60  ;;  %v4544_v59 = vld [vmem:[#allocation5 + $0x18c] ss:$16 sps:$4 sm:$0xff]  }
 0x168   : > { %2783 = vmatprep.subr.bf16.mxu1 %v4469_v61  ;;  %v4547_v60 = vld [vmem:[#allocation5 + $0x38c] ss:$16 sps:$4 sm:$0xff]   ;;  %v4542_v61 = vld [vmem:[#allocation5 + $0x188] ss:$16 sps:$4 sm:$0xff]  }
 0x16a   : > { %2743 = vmatpush2.bf16.msra.mxu0 %v4464_v62  ;;  %v4545_v62 = vld [vmem:[#allocation5 + $0x388] ss:$16 sps:$4 sm:$0xff]  }
 0x16b   : > { %2784 = vmatpush2.bf16.msra.mxu1 %v4467_v63  ;;  %2744 = vmatprep.subr.bf16.mxu0 %v4472_v1  ;;  %v4550_v63 = vld [vmem:[#allocation5 + $0x16c] ss:$16 sps:$4 sm:$0xff]  }
 0x16c   : > { %2785 = vmatprep.subr.bf16.mxu1 %v4475_v2  ;;  %v4553_v1 = vld [vmem:[#allocation5 + $0x36c] ss:$16 sps:$4 sm:$0xff]   ;;  %v4548_v2 = vld [vmem:[#allocation5 + $0x168] ss:$16 sps:$4 sm:$0xff]  }
 0x16e   : > { %2745 = vmatpush2.bf16.msra.mxu0 %v4470_v3  ;;  %v4551_v3 = vld [vmem:[#allocation5 + $0x368] ss:$16 sps:$4 sm:$0xff]  }
 0x16f   : > { %2786 = vmatpush2.bf16.msra.mxu1 %v4473_v4  ;;  %2796 = vmatprep.subr.bf16.mxu0 %v4478_v5  ;;  %v4556_v4 = vld [vmem:[#allocation5 + $0x14c] ss:$16 sps:$4 sm:$0xff]  }
 0x170   : > { %2837 = vmatprep.subr.bf16.mxu1 %v4481_v13  ;;  %v4559_v5 = vld [vmem:[#allocation5 + $0x34c] ss:$16 sps:$4 sm:$0xff]   ;;  %v4554_v13 = vld [vmem:[#allocation5 + $0x148] ss:$16 sps:$4 sm:$0xff]  }
 0x171   : > { %2747 = vmatmul.mubr.bf16.vlgmr.msra.gmra.mxu0 %v5105_v17 }
 0x172   : > { %2788 = vmatmul.mubr.bf16.vlgmr.msra.gmra.mxu1 %v5103_v15  ;;  %2797 = vmatpush1.bf16.msra.mxu0 %v4476_v14  ;;  %v4557_v14 = vld [vmem:[#allocation5 + $0x348] ss:$16 sps:$4 sm:$0xff]  }
 0x173   : > { %2828 = vmatprep.mubr.bf16.mxu0 %v5075_v35  ;;  %2838 = vmatpush1.bf16.msra.mxu1 %v4479_v16  ;;  %v4497_v35 = vld [vmem:[#allocation5 + $0x288] ss:$16 sps:$4 sm:$0xff]   ;;  %v4562_v16 = vld [vmem:[#allocation5 + $0x12c] ss:$16 sps:$4 sm:$0xff]  }
 0x174   : > { %2869 = vmatprep.mubr.bf16.mxu1 %v5077_v38  ;;  %2798 = vmatprep.subr.bf16.mxu0 %v4484_v18  ;;  %v4500_v38 = vld [vmem:[#allocation5 + $0x68] ss:$16 sps:$4 sm:$0xff]   ;;  %v4565_v18 = vld [vmem:[#allocation5 + $0x32c] ss:$16 sps:$4 sm:$0xff]  }
 0x175   : > { %2839 = vmatprep.subr.bf16.mxu1 %v4487_v19  ;;  %v4560_v19 = vld [vmem:[#allocation5 + $0x128] ss:$16 sps:$4 sm:$0xff]  }
 0x176   : > { %2799 = vmatpush1.bf16.msra.mxu0 %v4482_v20  ;;  %v4563_v20 = vld [vmem:[#allocation5 + $0x328] ss:$16 sps:$4 sm:$0xff]  }
 0x177   : > { %2840 = vmatpush1.bf16.msra.mxu1 %v4485_v21  ;;  %2800 = vmatprep.subr.bf16.mxu0 %v4490_v12  ;;  %v4568_v21 = vld [vmem:[#allocation5 + $0x10c] ss:$16 sps:$4 sm:$0xff]  }
 0x178   : > { %2841 = vmatprep.subr.bf16.mxu1 %v4493_v22  ;;  %v4571_v12 = vld [vmem:[#allocation5 + $0x30c] ss:$16 sps:$4 sm:$0xff]   ;;  %v4566_v22 = vld [vmem:[#allocation5 + $0x108] ss:$16 sps:$4 sm:$0xff]  }
 0x17a   : > { %2801 = vmatpush1.bf16.msra.mxu0 %v4488_v23  ;;  %v4569_v23 = vld [vmem:[#allocation5 + $0x308] ss:$16 sps:$4 sm:$0xff]  }
 0x17b   : > { %2842 = vmatpush1.bf16.msra.mxu1 %v4491_v24  ;;  %2802 = vmatprep.subr.bf16.mxu0 %v4496_v25  ;;  %v4574_v24 = vld [vmem:[#allocation5 + $0x4ec] ss:$16 sps:$4 sm:$0xff]  }
 0x17c   : > { %2843 = vmatprep.subr.bf16.mxu1 %v4499_v26  ;;  %v4577_v25 = vld [vmem:[#allocation5 + $0x6ec] ss:$16 sps:$4 sm:$0xff]   ;;  %v4572_v26 = vld [vmem:[#allocation5 + $0x4e8] ss:$16 sps:$4 sm:$0xff]  }
 0x17e   : > { %2803 = vmatpush1.bf16.msra.mxu0 %v4494_v28  ;;  %v4575_v28 = vld [vmem:[#allocation5 + $0x6e8] ss:$16 sps:$4 sm:$0xff]  }
 0x17f   : > { %2844 = vmatpush1.bf16.msra.mxu1 %v4497_v35  ;;  %2804 = vmatprep.subr.bf16.mxu0 %v4502_v29  ;;  %v4580_v35 = vld [vmem:[#allocation5 + $0x4cc] ss:$16 sps:$4 sm:$0xff]  }
 0x180   : > { %2845 = vmatprep.subr.bf16.mxu1 %v4505_v31  ;;  %v4583_v29 = vld [vmem:[#allocation5 + $0x6cc] ss:$16 sps:$4 sm:$0xff]   ;;  %v4578_v31 = vld [vmem:[#allocation5 + $0x4c8] ss:$16 sps:$4 sm:$0xff]  }
 0x182   : > { %2805 = vmatpush1.bf16.msra.mxu0 %v4500_v38  ;;  %v4581_v38 = vld [vmem:[#allocation5 + $0x6c8] ss:$16 sps:$4 sm:$0xff]  }
 0x183   : > { %2846 = vmatpush1.bf16.msra.mxu1 %v4503_v34  ;;  %2806 = vmatprep.subr.bf16.mxu0 %v4508_v36  ;;  %v4586_v34 = vld [vmem:[#allocation5 + $0x4ac] ss:$16 sps:$4 sm:$0xff]  }
 0x184   : > { %2847 = vmatprep.subr.bf16.mxu1 %v4511_v37  ;;  %v4589_v36 = vld [vmem:[#allocation5 + $0x6ac] ss:$16 sps:$4 sm:$0xff]   ;;  %v4584_v37 = vld [vmem:[#allocation5 + $0x4a8] ss:$16 sps:$4 sm:$0xff]  }
 0x186   : > { %2807 = vmatpush1.bf16.msra.mxu0 %v4506_v39  ;;  %v4592_v39 = vld [vmem:[#allocation5 + $0x48c] ss:$16 sps:$4 sm:$0xff]  }
 0x187   : > { %2848 = vmatpush1.bf16.msra.mxu1 %v4509_v40  ;;  %2808 = vmatprep.subr.bf16.mxu0 %v4514_v0  ;;  %v4590_v40 = vld [vmem:[#allocation5 + $0x488] ss:$16 sps:$4 sm:$0xff]   ;;  %v4598_v0 = vld [vmem:[#allocation5 + $0x46c] ss:$16 sps:$4 sm:$0xff]  }
 0x188   : > { %2849 = vmatprep.subr.bf16.mxu1 %v4517_v41  ;;  %v4601_v41 = vld [vmem:[#allocation5 + $0x66c] ss:$16 sps:$4 sm:$0xff]  }
 0x18a   : > { %2809 = vmatpush1.bf16.msra.mxu0 %v4512_v42  ;;  %v4599_v42 = vld [vmem:[#allocation5 + $0x668] ss:$16 sps:$4 sm:$0xff]  }
 0x18b   : > { %2850 = vmatpush1.bf16.msra.mxu1 %v4515_v43  ;;  %2810 = vmatprep.subr.bf16.mxu0 %v4520_v44  ;;  %v4604_v43 = vld [vmem:[#allocation5 + $0x44c] ss:$16 sps:$4 sm:$0xff]  }
 0x18c   : > { %2851 = vmatprep.subr.bf16.mxu1 %v4523_v45  ;;  %v4607_v44 = vld [vmem:[#allocation5 + $0x64c] ss:$16 sps:$4 sm:$0xff]   ;;  %v4602_v45 = vld [vmem:[#allocation5 + $0x448] ss:$16 sps:$4 sm:$0xff]  }
 0x18e   : > { %2811 = vmatpush1.bf16.msra.mxu0 %v4518_v46  ;;  %v4605_v46 = vld [vmem:[#allocation5 + $0x648] ss:$16 sps:$4 sm:$0xff]  }
 0x18f   : > { %2852 = vmatpush1.bf16.msra.mxu1 %v4521_v47  ;;  %2812 = vmatprep.subr.bf16.mxu0 %v4526_v48  ;;  %v4610_v47 = vld [vmem:[#allocation5 + $0x42c] ss:$16 sps:$4 sm:$0xff]  }
 0x190   : > { %2853 = vmatprep.subr.bf16.mxu1 %v4529_v49  ;;  %v4613_v48 = vld [vmem:[#allocation5 + $0x62c] ss:$16 sps:$4 sm:$0xff]   ;;  %v4608_v49 = vld [vmem:[#allocation5 + $0x428] ss:$16 sps:$4 sm:$0xff]  }
 0x192   : > { %2813 = vmatpush2.bf16.msra.mxu0 %v4524_v50  ;;  %v4611_v50 = vld [vmem:[#allocation5 + $0x628] ss:$16 sps:$4 sm:$0xff]  }
 0x193   : > { %2854 = vmatpush2.bf16.msra.mxu1 %v4527_v52  ;;  %2814 = vmatprep.subr.bf16.mxu0 %v4532_v8  ;;  %v4616_v52 = vld [vmem:[#allocation5 + $0x40c] ss:$16 sps:$4 sm:$0xff]  }
 0x194   : > { %2855 = vmatprep.subr.bf16.mxu1 %v4535_v53  ;;  %v4619_v8 = vld [vmem:[#allocation5 + $0x60c] ss:$16 sps:$4 sm:$0xff]   ;;  %v4614_v53 = vld [vmem:[#allocation5 + $0x408] ss:$16 sps:$4 sm:$0xff]  }
 0x196   : > { %2815 = vmatpush2.bf16.msra.mxu0 %v4530_v54  ;;  %v4617_v54 = vld [vmem:[#allocation5 + $0x608] ss:$16 sps:$4 sm:$0xff]  }
 0x197   : > { %2856 = vmatpush2.bf16.msra.mxu1 %v4533_v56  ;;  %2816 = vmatprep.subr.bf16.mxu0 %v4538_v57  ;;  %v4622_v56 = vld [vmem:[#allocation5 + $0x5ec] ss:$16 sps:$4 sm:$0xff]  }
 0x198   : > { %2857 = vmatprep.subr.bf16.mxu1 %v4541_v58  ;;  %v4625_v57 = vld [vmem:[#allocation5 + $0x7ec] ss:$16 sps:$4 sm:$0xff]   ;;  %v4620_v58 = vld [vmem:[#allocation5 + $0x5e8] ss:$16 sps:$4 sm:$0xff]  }
 0x19a   : > { %2817 = vmatpush2.bf16.msra.mxu0 %v4536_v55  ;;  %v4623_v55 = vld [vmem:[#allocation5 + $0x7e8] ss:$16 sps:$4 sm:$0xff]  }
 0x19b   : > { %2858 = vmatpush2.bf16.msra.mxu1 %v4539_v51  ;;  %2818 = vmatprep.subr.bf16.mxu0 %v4544_v59  ;;  %v4628_v51 = vld [vmem:[#allocation5 + $0x5cc] ss:$16 sps:$4 sm:$0xff]  }
 0x19c   : > { %2859 = vmatprep.subr.bf16.mxu1 %v4547_v60  ;;  %v4631_v59 = vld [vmem:[#allocation5 + $0x7cc] ss:$16 sps:$4 sm:$0xff]   ;;  %v4626_v60 = vld [vmem:[#allocation5 + $0x5c8] ss:$16 sps:$4 sm:$0xff]  }
 0x19e   : > { %2819 = vmatpush2.bf16.msra.mxu0 %v4542_v61  ;;  %v4629_v61 = vld [vmem:[#allocation5 + $0x7c8] ss:$16 sps:$4 sm:$0xff]  }
 0x19f   : > { %2860 = vmatpush2.bf16.msra.mxu1 %v4545_v62  ;;  %2820 = vmatprep.subr.bf16.mxu0 %v4550_v63  ;;  %v4634_v62 = vld [vmem:[#allocation5 + $0x5ac] ss:$16 sps:$4 sm:$0xff]  }
 0x1a0   : > { %2861 = vmatprep.subr.bf16.mxu1 %v4553_v1  ;;  %v4637_v63 = vld [vmem:[#allocation5 + $0x7ac] ss:$16 sps:$4 sm:$0xff]   ;;  %v4632_v1 = vld [vmem:[#allocation5 + $0x5a8] ss:$16 sps:$4 sm:$0xff]  }
 0x1a2   : > { %2821 = vmatpush2.bf16.msra.mxu0 %v4548_v2  ;;  %v4635_v2 = vld [vmem:[#allocation5 + $0x7a8] ss:$16 sps:$4 sm:$0xff]  }
 0x1a3   : > { %2862 = vmatpush2.bf16.msra.mxu1 %v4551_v3  ;;  %2822 = vmatprep.subr.bf16.mxu0 %v4556_v4  ;;  %v4640_v3 = vld [vmem:[#allocation5 + $0x58c] ss:$16 sps:$4 sm:$0xff]  }
 0x1a4   : > { %2863 = vmatprep.subr.bf16.mxu1 %v4559_v5  ;;  %v4643_v4 = vld [vmem:[#allocation5 + $0x78c] ss:$16 sps:$4 sm:$0xff]   ;;  %v4638_v5 = vld [vmem:[#allocation5 + $0x588] ss:$16 sps:$4 sm:$0xff]  }
 0x1a6   : > { %2823 = vmatpush2.bf16.msra.mxu0 %v4554_v13  ;;  %v4641_v13 = vld [vmem:[#allocation5 + $0x788] ss:$16 sps:$4 sm:$0xff]  }
 0x1a7   : > { %2864 = vmatpush2.bf16.msra.mxu1 %v4557_v14  ;;  %2824 = vmatprep.subr.bf16.mxu0 %v4562_v16  ;;  %v4646_v14 = vld [vmem:[#allocation5 + $0x56c] ss:$16 sps:$4 sm:$0xff]  }
 0x1a8   : > { %2865 = vmatprep.subr.bf16.mxu1 %v4565_v18  ;;  %v4649_v16 = vld [vmem:[#allocation5 + $0x76c] ss:$16 sps:$4 sm:$0xff]   ;;  %v4644_v18 = vld [vmem:[#allocation5 + $0x568] ss:$16 sps:$4 sm:$0xff]  }
 0x1aa   : > { %2825 = vmatpush2.bf16.msra.mxu0 %v4560_v19  ;;  %v4647_v19 = vld [vmem:[#allocation5 + $0x768] ss:$16 sps:$4 sm:$0xff]  }
 0x1ab   : > { %2866 = vmatpush2.bf16.msra.mxu1 %v4563_v20  ;;  %2826 = vmatprep.subr.bf16.mxu0 %v4568_v21  ;;  %v4652_v20 = vld [vmem:[#allocation5 + $0x54c] ss:$16 sps:$4 sm:$0xff]  }
 0x1ac   : > { %2867 = vmatprep.subr.bf16.mxu1 %v4571_v12  ;;  %v4655_v21 = vld [vmem:[#allocation5 + $0x74c] ss:$16 sps:$4 sm:$0xff]   ;;  %v4650_v12 = vld [vmem:[#allocation5 + $0x548] ss:$16 sps:$4 sm:$0xff]  }
 0x1ae   : > { %2827 = vmatpush2.bf16.msra.mxu0 %v4566_v22  ;;  %v4653_v22 = vld [vmem:[#allocation5 + $0x748] ss:$16 sps:$4 sm:$0xff]  }
 0x1af   : > { %2868 = vmatpush2.bf16.msra.mxu1 %v4569_v23  ;;  %2878 = vmatprep.subr.bf16.mxu0 %v4574_v24  ;;  %v4658_v23 = vld [vmem:[#allocation5 + $0x52c] ss:$16 sps:$4 sm:$0xff]  }
 0x1b0   : > { %2919 = vmatprep.subr.bf16.mxu1 %v4577_v25  ;;  %v4661_v24 = vld [vmem:[#allocation5 + $0x72c] ss:$16 sps:$4 sm:$0xff]   ;;  %v4656_v25 = vld [vmem:[#allocation5 + $0x528] ss:$16 sps:$4 sm:$0xff]  }
 0x1b1   : > { %2829 = vmatmul.mubr.bf16.vlgmr.msra.gmra.mxu0 %v5071_v32  ;;  %v4587_v32 = vld [vmem:[#allocation5 + $0x6a8] ss:$16 sps:$4 sm:$0xff]  }
 0x1b2   : > { %2870 = vmatmul.mubr.bf16.vlgmr.msra.gmra.mxu1 %v5073_v33  ;;  %2879 = vmatpush1.bf16.msra.mxu0 %v4572_v26  ;;  %v4595_v33 = vld [vmem:[#allocation5 + $0x68c] ss:$16 sps:$4 sm:$0xff]   ;;  %v4659_v26 = vld [vmem:[#allocation5 + $0x728] ss:$16 sps:$4 sm:$0xff]  }
 0x1b3   : > { %2910 = vmatprep.mubr.bf16.mxu0 %v5091_v27  ;;  %2920 = vmatpush1.bf16.msra.mxu1 %v4575_v28  ;;  %v4593_v27 = vld [vmem:[#allocation5 + $0x688] ss:$16 sps:$4 sm:$0xff]   ;;  %v4664_v28 = vld [vmem:[#allocation5 + $0x50c] ss:$16 sps:$4 sm:$0xff]  }
 0x1b4   : > { %2951 = vmatprep.mubr.bf16.mxu1 %v5093_v30  ;;  %2880 = vmatprep.subr.bf16.mxu0 %v4580_v35  ;;  %v4596_v30 = vld [vmem:[#allocation5 + $0x468] ss:$16 sps:$4 sm:$0xff]   ;;  %v4667_v35 = vld [vmem:[#allocation5 + $0x70c] ss:$16 sps:$4 sm:$0xff]  }
 0x1b5   : > { %2921 = vmatprep.subr.bf16.mxu1 %v4583_v29  ;;  %v4662_v29 = vld [vmem:[#allocation5 + $0x508] ss:$16 sps:$4 sm:$0xff]  }
 0x1b6   : > { %2881 = vmatpush1.bf16.msra.mxu0 %v4578_v31  ;;  %v4665_v31 = vld [vmem:[#allocation5 + $0x708] ss:$16 sps:$4 sm:$0xff]  }
 0x1b7   : > { %2922 = vmatpush1.bf16.msra.mxu1 %v4581_v38  ;;  %2882 = vmatprep.subr.bf16.mxu0 %v4586_v34  ;;  %v4668_v38 = vld [vmem:[%s5354_s5 + $0x78] sm:$0xff]  }
 0x1b8   : > { %2923 = vmatprep.subr.bf16.mxu1 %v4589_v36  ;;  %v4669_v34 = vld [vmem:[%s5354_s5 + $0x38] sm:$0xff]   ;;  %v4670_v36 = vld [vmem:[%s5354_s5 + $0x70] sm:$0xff]  }
 0x1ba   : > { %2883 = vmatpush1.bf16.msra.mxu0 %v4584_v37 }
 0x1bb   : > { %2924 = vmatpush1.bf16.msra.mxu1 %v4587_v32  ;;  %2884 = vmatprep.subr.bf16.mxu0 %v4592_v39  ;;  %v4671_v39 = vld [vmem:[%s5354_s5 + $0x30] sm:$0xff]  }
 0x1bc   : > { %2925 = vmatprep.subr.bf16.mxu1 %v4595_v33 }
 0x1be   : > { %2885 = vmatpush1.bf16.msra.mxu0 %v4590_v40  ;;  %v4672_v40 = vld [vmem:[%s5354_s5 + $0x68] sm:$0xff]  }
 0x1bf   : > { %2926 = vmatpush1.bf16.msra.mxu1 %v4593_v27  ;;  %2886 = vmatprep.subr.bf16.mxu0 %v4598_v0 }
 0x1c0   : > { %2927 = vmatprep.subr.bf16.mxu1 %v4601_v41 }
 0x1c2   : > { %2887 = vmatpush1.bf16.msra.mxu0 %v4596_v30  ;;  %v4674_v30 = vld [vmem:[%s5354_s5 + $0x60] sm:$0xff]  }
 0x1c3   : > { %2928 = vmatpush1.bf16.msra.mxu1 %v4599_v42  ;;  %2888 = vmatprep.subr.bf16.mxu0 %v4604_v43  ;;  %v4684_v43 = vld [vmem:[%s5354_s5 + $0xf8] sm:$0xff]  }
 0x1c4   : > { %2929 = vmatprep.subr.bf16.mxu1 %v4607_v44  ;;  %v4685_v44 = vld [vmem:[%s5354_s5 + $0xb8] sm:$0xff]  }
 0x1c6   : > { %2889 = vmatpush1.bf16.msra.mxu0 %v4602_v45  ;;  %v4686_v45 = vld [vmem:[%s5354_s5 + $0xf0] sm:$0xff]  }
 0x1c7   : > { %2930 = vmatpush1.bf16.msra.mxu1 %v4605_v46  ;;  %2890 = vmatprep.subr.bf16.mxu0 %v4610_v47  ;;  %v4675_v46 = vld [vmem:[%s5354_s5 + $0x20] sm:$0xff]   ;;  %v4676_v47 = vld [vmem:[%s5354_s5 + $0x58] sm:$0xff]  }
 0x1c8   : > { %2931 = vmatprep.subr.bf16.mxu1 %v4613_v48  ;;  %v4687_v48 = vld [vmem:[%s5354_s5 + $0xb0] sm:$0xff]  }
 0x1ca   : > { %2891 = vmatpush1.bf16.msra.mxu0 %v4608_v49  ;;  %v4677_v49 = vld [vmem:[%s5354_s5 + $0x18] sm:$0xff]  }
 0x1cb   : > { %2932 = vmatpush1.bf16.msra.mxu1 %v4611_v50  ;;  %2892 = vmatprep.subr.bf16.mxu0 %v4616_v52  ;;  %v4678_v50 = vld [vmem:[%s5354_s5 + $0x50] sm:$0xff]  }
 0x1cc   : > { %2933 = vmatprep.subr.bf16.mxu1 %v4619_v8  ;;  %v4679_v52 = vld [vmem:[%s5354_s5 + $0x10] sm:$0xff]   ;;  %v4680_v8 = vld [vmem:[%s5354_s5 + $0x48] sm:$0xff]  }
 0x1ce   : > { %2893 = vmatpush1.bf16.msra.mxu0 %v4614_v53  ;;  %v4681_v53 = vld [vmem:[%s5354_s5 + $0x8] sm:$0xff]  }
 0x1cf   : > { %2934 = vmatpush1.bf16.msra.mxu1 %v4617_v54  ;;  %2894 = vmatprep.subr.bf16.mxu0 %v4622_v56  ;;  %v4682_v54 = vld [vmem:[%s5354_s5 + $0x40] sm:$0xff]  }
 0x1d0   : > { %2935 = vmatprep.subr.bf16.mxu1 %v4625_v57  ;;  %v4683_v56 = vld [vmem:[%s5354_s5] sm:$0xff]  }
 0x1d1   : > { %v1330_v57 = vld [vmem:[%s5353_s4] sm:$0xf] }
 0x1d2   : > { %2895 = vmatpush2.bf16.msra.mxu0 %v4620_v58  ;;  %v1335_v58 = vrot.slane %v1330_v57, %v536_v7 }
 0x1d3   : > { %2936 = vmatpush2.bf16.msra.mxu1 %v4623_v55  ;;  %2896 = vmatprep.subr.bf16.mxu0 %v4628_v51  ;;  %v1339_v55 = vrot.slane %v1330_v57, %v540_v10 }
 0x1d4   : > { %2937 = vmatprep.subr.bf16.mxu1 %v4631_v59 }
 0x1d6   : > { %2897 = vmatpush2.bf16.msra.mxu0 %v4626_v60 }
 0x1d7   : > { %2938 = vmatpush2.bf16.msra.mxu1 %v4629_v61  ;;  %2898 = vmatprep.subr.bf16.mxu0 %v4634_v62 }
 0x1d8   : > { %2939 = vmatprep.subr.bf16.mxu1 %v4637_v63 }
 0x1da   : > { %2899 = vmatpush2.bf16.msra.mxu0 %v4632_v1 }
 0x1db   : > { %2940 = vmatpush2.bf16.msra.mxu1 %v4635_v2  ;;  %2900 = vmatprep.subr.bf16.mxu0 %v4640_v3  ;;  %v4688_v2 = vld [vmem:[%s5354_s5 + $0xe8] sm:$0xff]  }
 0x1dc   : > { %2941 = vmatprep.subr.bf16.mxu1 %v4643_v4  ;;  %v4689_v4 = vld [vmem:[%s5354_s5 + $0xa8] sm:$0xff]  }
 0x1de   : > { %2901 = vmatpush2.bf16.msra.mxu0 %v4638_v5 }
 0x1df   : > { %2942 = vmatpush2.bf16.msra.mxu1 %v4641_v13  ;;  %2902 = vmatprep.subr.bf16.mxu0 %v4646_v14 }
 0x1e0   : > { %2943 = vmatprep.subr.bf16.mxu1 %v4649_v16 }
 0x1e2   : > { %2903 = vmatpush2.bf16.msra.mxu0 %v4644_v18  ;;  %v4690_v18 = vld [vmem:[%s5354_s5 + $0xe0] sm:$0xff]  }
 0x1e3   : > { %2944 = vmatpush2.bf16.msra.mxu1 %v4647_v19  ;;  %2904 = vmatprep.subr.bf16.mxu0 %v4652_v20 }
 0x1e4   : > { %2945 = vmatprep.subr.bf16.mxu1 %v4655_v21  ;;  %v4691_v21 = vld [vmem:[%s5354_s5 + $0xa0] sm:$0xff]  }
 0x1e6   : > { %2905 = vmatpush2.bf16.msra.mxu0 %v4650_v12 }
 0x1e7   : > { %2946 = vmatpush2.bf16.msra.mxu1 %v4653_v22  ;;  %2906 = vmatprep.subr.bf16.mxu0 %v4658_v23  ;;  %v4692_v23 = vld [vmem:[%s5354_s5 + $0xd8] sm:$0xff]  }
 0x1e8   : > { %2947 = vmatprep.subr.bf16.mxu1 %v4661_v24  ;;  %v4693_v24 = vld [vmem:[%s5354_s5 + $0x98] sm:$0xff]  }
 0x1ea   : > { %2907 = vmatpush2.bf16.msra.mxu0 %v4656_v25  ;;  %v4694_v25 = vld [vmem:[%s5354_s5 + $0xd0] sm:$0xff]  }
 0x1eb   : > { %2948 = vmatpush2.bf16.msra.mxu1 %v4659_v26  ;;  %2908 = vmatprep.subr.bf16.mxu0 %v4664_v28  ;;  %v4695_v26 = vld [vmem:[%s5354_s5 + $0x90] sm:$0xff]   ;;  %v4696_v28 = vld [vmem:[%s5354_s5 + $0xc8] sm:$0xff]  }
 0x1ec   : > { %2949 = vmatprep.subr.bf16.mxu1 %v4667_v35  ;;  %v4697_v35 = vld [vmem:[%s5354_s5 + $0x88] sm:$0xff]  }
 0x1ee   : > { %2909 = vmatpush2.bf16.msra.mxu0 %v4662_v29  ;;  %v4698_v29 = vld [vmem:[%s5354_s5 + $0xc0] sm:$0xff]  }
 0x1ef   : > { %2950 = vmatpush2.bf16.msra.mxu1 %v4665_v31  ;;  %4125 = vmatprep.subr.bf16.mxu0 %v4668_v38  ;;  %v4699_v31 = vld [vmem:[%s5354_s5 + $0x80] sm:$0xff]  }
 0x1f0   : > { %4147 = vmatprep.subr.bf16.mxu1 %v4684_v43 }
 0x1f1   : > { %2911 = vmatmul.mubr.bf16.vlgmr.msra.gmra.mxu0 %v5105_v17  ;;  %v2666_v37 = vpop.f32.mrf.mxu0 }
 0x1f2   : > { %2952 = vmatmul.mubr.bf16.vlgmr.msra.gmra.mxu1 %v5103_v15  ;;  %v2707_v32 = vpop.f32.mrf.mxu1  ;;  %4126 = vmatpush3.bf16.msra.mxu0 %v4669_v34  ;;  %v4673_v15 = vld [vmem:[%s5354_s5 + $0x28] sm:$0xff]   ;;  %v2667_v51 = vadd.f32 %v2666_v37, %v1335_v58 }
 0x1f3   : > { %v2668_v33 = vpop.f32.mrf.mxu0  ;;  %4127 = vmatprep.subr.bf16.mxu0 %v4670_v36  ;;  %4148 = vmatpush3.bf16.msra.mxu1 %v4685_v44 }
 0x1f4   : > { %v2709_v27 = vpop.f32.mrf.mxu1  ;;  %4149 = vmatprep.subr.bf16.mxu1 %v4686_v45  ;;  %v2669_v59 = vadd.f32 %v2668_v33, %v1339_v55  ;;  %v2708_v60 = vadd.f32 %v2707_v32, %v2667_v51 }
 0x1f5   : > { %v2670_v0 = vpop.f32.mrf.mxu0 }
 0x1f6   : > { %v2711_v41 = vpop.f32.mrf.mxu1  ;;  %4128 = vmatpush3.bf16.msra.mxu0 %v4671_v39  ;;  %v2710_v62 = vadd.f32 %v2709_v27, %v2669_v59 }
 0x1f7   : > { %v2671_v17 = vpop.f32.mrf.mxu0  ;;  %4129 = vmatprep.subr.bf16.mxu0 %v4672_v40  ;;  %4150 = vmatpush3.bf16.msra.mxu1 %v4687_v48  ;;  %v1343_v41 = vrot.slane %v1330_v57, %v544_v9 }
 0x1f8   : > { %v2712_v42 = vpop.f32.mrf.mxu1  ;;  %4151 = vmatprep.subr.bf16.mxu1 %v4688_v2  ;;  %v3312_v2 = vld [vmem:[%s5356_s7] sm:$0xff] }
 0x1fa   : > { %4130 = vmatpush3.bf16.msra.mxu0 %v4673_v15  ;;  %v1347_v15 = vrot.slane %v1330_v57, %v548_v11 }
 0x1fb   : > { %4131 = vmatprep.subr.bf16.mxu0 %v4674_v30  ;;  %4152 = vmatpush3.bf16.msra.mxu1 %v4689_v4 }
 0x1fc   : > { %4153 = vmatprep.subr.bf16.mxu1 %v4690_v18 }
 0x1fe   : > { %4132 = vmatpush3.bf16.msra.mxu0 %v4675_v46 }
 0x1ff   : > { %4133 = vmatprep.subr.bf16.mxu0 %v4676_v47  ;;  %4154 = vmatpush3.bf16.msra.mxu1 %v4691_v21 }
 0x200   : > { %4155 = vmatprep.subr.bf16.mxu1 %v4692_v23 }
 0x202   : > { %4134 = vmatpush3.bf16.msra.mxu0 %v4677_v49 }
 0x203   : > { %4135 = vmatprep.subr.bf16.mxu0 %v4678_v50  ;;  %4156 = vmatpush3.bf16.msra.mxu1 %v4693_v24 }
 0x204   : > { %4157 = vmatprep.subr.bf16.mxu1 %v4694_v25 }
 0x206   : > { %4136 = vmatpush3.bf16.msra.mxu0 %v4679_v52 }
 0x207   : > { %4137 = vmatprep.subr.bf16.mxu0 %v4680_v8  ;;  %4158 = vmatpush3.bf16.msra.mxu1 %v4695_v26 }
 0x208   : > { %4159 = vmatprep.subr.bf16.mxu1 %v4696_v28 }
 0x20a   : > { %4138 = vmatpush3.bf16.msra.mxu0 %v4681_v53 }
 0x20b   : > { %4139 = vmatprep.subr.bf16.mxu0 %v4682_v54  ;;  %4160 = vmatpush3.bf16.msra.mxu1 %v4697_v35  ;;  %v4111_v35 = vld [vmem:[%s5356_s7 + $0x38] sm:$0xff] }
 0x20c   : > { %4161 = vmatprep.subr.bf16.mxu1 %v4698_v29  ;;  %v4110_v29 = vld [vmem:[%s5356_s7 + $0x30] sm:$0xff] }
 0x20e   : > { %4140 = vmatpush3.bf16.msra.mxu0 %v4683_v56 }
 0x20f   : > { %4162 = vmatpush3.bf16.msra.mxu1 %v4699_v31  ;;  %v4109_v31 = vld [vmem:[%s5356_s7 + $0x28] sm:$0xff] }
 0x231   : > { %v2748_v61 = vpop.f32.mrf.mxu0 }
 0x232   : > { %v2749_v63 = vadd.f32 %v2748_v61, %v2708_v60  ;;  %v2789_v1 = vpop.f32.mrf.mxu1  ;;  %v3315_v61 = vld [vmem:[%s5356_s7 + $0x18] sm:$0xff] }
 0x233   : > { %v2750_v3 = vpop.f32.mrf.mxu0 }
 0x234   : > { %v2790_v7 = vadd.f32 %v2789_v1, %v2749_v63  ;;  %v2751_v5 = vadd.f32 %v2750_v3, %v2710_v62  ;;  %v2791_v13 = vpop.f32.mrf.mxu1  ;;  %v4869_v62 = vmov 0.0   ;;  %v3314_v63 = vld [vmem:[%s5356_s7 + $0x10] sm:$0xff]  ;;  %v3313_v1 = vld [vmem:[%s5356_s7 + $0x8] sm:$0xff]  ;;  %v4071_v3 = vld [vmem:[%s5355_s6] ss:$0 sm:$0xff] }
 0x235   : > { %v2752_v10 = vpop.f32.mrf.mxu0  ;;  %4184 = vmatprep.subr.mxu0 %v4869_v62  ;;  %4195 = vmatprep.subr.mxu1 %v4869_v62 }
 0x236   : > { %v2792_v14 = vadd.f32 %v2791_v13, %v2751_v5  ;;  %v2793_v16 = vpop.f32.mrf.mxu1  ;;  %v2960_v19 = vpack.c.bf16 %v2790_v7, %v2790_v7 }
 0x237   : > { %v2753_v20 = vpop.f32.mrf.mxu0 }
 0x238   : > { %v2961_v12 = vpack.c.bf16 %v2792_v14, %v2792_v14  ;;  %v2794_v22 = vpop.f32.mrf.mxu1 }
 0x23a   : > { %4716 = vtanh.bf16 %v2961_v12 }
 0x23b   : > { %4718 = vtanh.bf16 %v2960_v19  ;;  %v4104_v19 = vld [vmem:[%s5357_s8] ss:$0 sm:$0xff] }
 0x248   : > { %v4717_v38 = vpop.eup %4716 }
 0x249   : > { %v4719_v34 = vpop.eup %4718  ;;  %3263 = vmatprep.mubr.bf16.mxu0 %v4717_v38  ;;  %v4108_v38 = vld [vmem:[%s5356_s7 + $0x20] sm:$0xff] }
 0x24a   : > { %3264 = vmatmul.mubr.bf16.vlgmr.msra.gmra.mxu0 %v4719_v34 }
 0x24b   : > { %4192 = vmatprep.mubr.msk.f32.mxu0 %vm4870_vm0, %v4869_v62  ;;  %4185 = vmatpush3.msra.mxu0 %v3315_v61 }
 0x24c   : > { %4186 = vmatprep.subr.mxu0 %v4869_v62 }
 0x24d   : > { %4187 = vmatpush3.msra.mxu0 %v3314_v63 }
 0x24e   : > { %4188 = vmatprep.subr.mxu0 %v4869_v62 }
 0x24f   : > { %4189 = vmatpush3.msra.mxu0 %v3313_v1 }
 0x250   : > { %4190 = vmatprep.subr.mxu0 %v4869_v62 }
 0x251   : > { %4191 = vmatpush3.msra.mxu0 %v3312_v2  ;;  %v4118_v2 = vld [vmem:[%s5359_s10 + $0x1] ss:$0 sm:$0xff] }
 0x252   : > { %4206 = vmatprep.subr.mxu0 %v4869_v62 }
 0x271   : > { %v2830_v36 = vpop.f32.mrf.mxu0 }
 0x272   : > { %v2871_v37 = vpop.f32.mrf.mxu1  ;;  %v2831_v17 = vadd.f32 %v2830_v36, %v1343_v41  ;;  %v4106_v41 = vld [vmem:[%s5358_s9] ss:$0 sm:$0xff] }
 0x273   : > { %v2832_v32 = vpop.f32.mrf.mxu0 }
 0x274   : > { %v2873_v39 = vpop.f32.mrf.mxu1  ;;  %v2833_v30 = vadd.f32 %v2832_v32, %v1347_v15  ;;  %v2872_v42 = vadd.f32 %v2871_v37, %v2831_v17  ;;  %v4107_v17 = vld [vmem:[%s5359_s10] ss:$0 sm:$0xff] }
 0x275   : > { %v2834_v33 = vpop.f32.mrf.mxu0 }
 0x276   : > { %v2875_v40 = vpop.f32.mrf.mxu1  ;;  %v2874_v44 = vadd.f32 %v2873_v39, %v2833_v30 }
 0x277   : > { %v2835_v27 = vpop.f32.mrf.mxu0 }
 0x278   : > { %v2876_v0 = vpop.f32.mrf.mxu1 }
 0x2b1   : > { %v2912_v43 = vpop.f32.mrf.mxu0 }
 0x2b2   : > { %v2913_v45 = vadd.f32 %v2912_v43, %v2872_v42  ;;  %v2953_v46 = vpop.f32.mrf.mxu1 }
 0x2b3   : > { %v2914_v47 = vpop.f32.mrf.mxu0 }
 0x2b4   : > { %v2954_v48 = vadd.f32 %v2953_v46, %v2913_v45  ;;  %v2915_v49 = vadd.f32 %v2914_v47, %v2874_v44  ;;  %v2955_v50 = vpop.f32.mrf.mxu1  ;;  %v4113_v44 = vld [vmem:[%s5357_s8 + $0x1] ss:$0 sm:$0xff] }
 0x2b5   : > { %v2916_v52 = vpop.f32.mrf.mxu0 }
 0x2b6   : > { %v2956_v8 = vadd.f32 %v2955_v50, %v2915_v49  ;;  %v2957_v53 = vpop.f32.mrf.mxu1  ;;  %v2962_v54 = vpack.c.bf16 %v2954_v48, %v2954_v48 }
 0x2b7   : > { %v2917_v56 = vpop.f32.mrf.mxu0 }
 0x2b8   : > { %v2963_v9 = vpack.c.bf16 %v2956_v8, %v2956_v8  ;;  %v2958_v58 = vpop.f32.mrf.mxu1  ;;  %v3562_v56 = vld [vmem:[%s5360_s11 + $0x10] sm:$0xff] }
 0x2b9   : > { %v3560_v58 = vld [vmem:[%s5360_s11] sm:$0xff] }
 0x2ba   : > { %4720 = vtanh.bf16 %v2963_v9  ;;  %v3561_v9 = vld [vmem:[%s5360_s11 + $0x8] sm:$0xff] }
 0x2bb   : > { %4722 = vtanh.bf16 %v2962_v54  ;;  %v3563_v54 = vld [vmem:[%s5360_s11 + $0x18] sm:$0xff] }
 0x2c8   : > { %v4721_v6 = vpop.eup %4720 }
 0x2c9   : > { %v4723_v11 = vpop.eup %4722  ;;  %3303 = vmatprep.mubr.bf16.mxu1 %v4721_v6 }
 0x2ca   : > { %3304 = vmatmul.mubr.bf16.vlgmr.msra.gmra.mxu1 %v4723_v11 }
 0x2cb   : > { %4203 = vmatprep.mubr.msk.f32.mxu1 %vm4870_vm0, %v4869_v62  ;;  %4196 = vmatpush3.msra.mxu1 %v4111_v35 }
 0x2cc   : > { %4197 = vmatprep.subr.mxu1 %v4869_v62 }
 0x2cd   : > { %4198 = vmatpush3.msra.mxu1 %v4110_v29 }
 0x2ce   : > { %4199 = vmatprep.subr.mxu1 %v4869_v62 }
 0x2cf   : > { %4200 = vmatpush3.msra.mxu1 %v4109_v31 }
 0x2d0   : > { %4201 = vmatprep.subr.mxu1 %v4869_v62 }
 0x2d1   : > { %4202 = vmatpush3.msra.mxu1 %v4108_v38 }
 0x30a   : > { %v4141_v57 = vpop.f32.mrf.mxu0 }
 0x30c   : > { %v4142_v55 = vpop.f32.mrf.mxu0 }
 0x30d   : > { %v4143_v51 = vadd.f32 %v4142_v55, %v4141_v57 }
 0x30e   : > { %v4144_v59 = vpop.f32.mrf.mxu0 }
 0x30f   : > { %v3266_v5 = vadd.f32 %v4143_v51, %v4071_v3 }
 0x310   : > { %v4145_v60 = vpop.f32.mrf.mxu0 }
 0x38a   : > { %v4163_v4 = vpop.f32.mrf.mxu1 }
 0x38c   : > { %v4164_v7 = vpop.f32.mrf.mxu1 }
 0x38d   : > { %v4165_v13 = vadd.f32 %v4164_v7, %v4163_v4 }
 0x38e   : > { %v4166_v10 = vpop.f32.mrf.mxu1 }
 0x38f   : > { %v3306_v14 = vadd.f32 %v4165_v13, %v3266_v5  ;;  %v4119_v5 = vld [vmem:[%s5361_s12] ss:$0 sm:$0xff] }
 0x390   : > { %v4167_v16 = vpop.f32.mrf.mxu1 }
 0x391   : > { %4724 = vtanh.f32 %v3306_v14 }
 0x39e   : > { %v4725_v18 = vpop.eup %4724 }
 0x39f   : > { %4193 = vmatmul.mubr.msk.f32.vlgmr.msra.gmra.mxu0 %vm3323_vm1, %v4725_v18 }
 0x3a0   : > { %4214 = vmatprep.mubr.msk.f32.mxu0 %vm4870_vm0, %v4869_v62  ;;  %4207 = vmatpush3.msra.mxu0 %v3563_v54 }
 0x3a1   : > { %4208 = vmatprep.subr.mxu0 %v4869_v62 }
 0x3a2   : > { %4209 = vmatpush3.msra.mxu0 %v3562_v56 }
 0x3a3   : > { %4210 = vmatprep.subr.mxu0 %v4869_v62 }
 0x3a4   : > { %4211 = vmatpush3.msra.mxu0 %v3561_v9 }
 0x3a5   : > { %4212 = vmatprep.subr.mxu0 %v4869_v62  ;;  %v4116_v62 = vld [vmem:[%s5358_s9 + $0x1] ss:$0 sm:$0xff] }
 0x3a6   : > { %4213 = vmatpush3.msra.mxu0 %v3560_v58 }
 0x45f   : > { %v3393_v20 = vpop.f32.mrf.mxu0 }
 0x460   : > { %v3394_v21 = vadd.f32 %v4104_v19, %v3393_v20 }
 0x461   : > { %v4194_v12 = vpop.f32.mrf.mxu0 }
 0x462   : > { %v3397_v22 = vsel %vm3323_vm1, %v3394_v21, 0.0 }
 0x463   : > { %3398 = vadd.xlane.f32.xlu0 %v3397_v22 }
 0x4ec   : > { %v3399_v23 = vpop.xlane.xlu0 %3398 }
 0x4ed   : > { %v3401_v24 = vmul.f32 0.03125, %v3399_v23 }
 0x4ef   : > { %v3402_v25 = vsub.f32 %v3394_v21, %v3401_v24 }
 0x4f1   : > { %v3403_v26 = vmul.f32 %v3402_v25, %v3402_v25 }
 0x4f3   : > { %v3404_v28 = vsel %vm3323_vm1, %v3403_v26, 0.0 }
 0x4f4   : > { %3405 = vadd.xlane.f32.xlu0 %v3404_v28 }
 0x57d   : > { %v3406_v34 = vpop.xlane.xlu0 %3405 }
 0x57e   : > { %v3407_v36 = vmul.f32 0.032258064, %v3406_v34 }
 0x580   : > { %4726 = vrsqrt.f32 %v3407_v36  ;;  %vm3410_vm2 = vcmp.eq.f32.partialorder %v3407_v36, inf  ;;  %v3413_v39 = vand.u32 2147483648, %v3407_v36  ;;  %vm3412_vm3 = vcmp.eq.f32.partialorder %v3407_v36, 0.0 }
 0x58d   : > { %v4727_v37 = vpop.eup %4726 }
 0x58e   : > { %v3409_v32 = vmul.f32 %v4727_v37, %v3407_v36 }
 0x590   : > { %v3411_v33 = vsel %vm3410_vm2, %v3407_v36, %v3409_v32 }
 0x591   : > { %v3414_v40 = vsel %vm3412_vm3, %v3413_v39, %v3411_v33 }
 0x592   : > { %v3415_v27 = vadd.f32 1e-06, %v3414_v40 }
 0x594   : > { %4728 = vrcp.f32 %v3415_v27 }
 0x5a1   : > { %v4729_v0 = vpop.eup %4728 }
 0x5a2   : > { %v3418_v15 = vmul.f32 %v4729_v0, %v3402_v25 }
 0x5a4   : > { %v3425_v30 = vmul.f32 %v4106_v41, %v3418_v15 }
 0x5a6   : > { %v3433_v42 = vadd.f32 %v4107_v17, %v3425_v30 }
 0x5a8   : > { %4730 = vtanh.f32 %v3433_v42 }
 0x5b5   : > { %v4731_v43 = vpop.eup %4730 }
 0x5b6   : > { %4204 = vmatmul.mubr.msk.f32.vlgmr.msra.gmra.mxu1 %vm3323_vm1, %v4731_v43 }
 0x676   : > { %v3517_v45 = vpop.f32.mrf.mxu1 }
 0x677   : > { %v3518_v46 = vadd.f32 %v4113_v44, %v3517_v45 }
 0x678   : > { %v4205_v47 = vpop.f32.mrf.mxu1 }
 0x679   : > { %v3521_v48 = vsel %vm3323_vm1, %v3518_v46, 0.0 }
 0x67a   : > { %3522 = vadd.xlane.f32.xlu1 %v3521_v48 }
 0x703   : > { %v3523_v49 = vpop.xlane.xlu1 %3522 }
 0x704   : > { %v3524_v50 = vmul.f32 0.03125, %v3523_v49 }
 0x706   : > { %v3525_v52 = vsub.f32 %v3518_v46, %v3524_v50 }
 0x708   : > { %v3526_v8 = vmul.f32 %v3525_v52, %v3525_v52 }
 0x70a   : > { %v3527_v53 = vsel %vm3323_vm1, %v3526_v8, 0.0 }
 0x70b   : > { %3528 = vadd.xlane.f32.xlu1 %v3527_v53 }
 0x794   : > { %v3529_v6 = vpop.xlane.xlu1 %3528 }
 0x795   : > { %v3530_v11 = vmul.f32 0.032258064, %v3529_v6 }
 0x797   : > { %4732 = vrsqrt.f32 %v3530_v11  ;;  %vm3533_vm4 = vcmp.eq.f32.partialorder %v3530_v11, inf  ;;  %v3536_v51 = vand.u32 2147483648, %v3530_v11  ;;  %vm3535_vm5 = vcmp.eq.f32.partialorder %v3530_v11, 0.0 }
 0x7a4   : > { %v4733_v57 = vpop.eup %4732 }
 0x7a5   : > { %v3532_v55 = vmul.f32 %v4733_v57, %v3530_v11 }
 0x7a7   : > { %v3534_v59 = vsel %vm3533_vm4, %v3530_v11, %v3532_v55 }
 0x7a8   : > { %v3537_v60 = vsel %vm3535_vm5, %v3536_v51, %v3534_v59 }
 0x7a9   : > { %v3538_v61 = vadd.f32 1e-06, %v3537_v60 }
 0x7ab   : > { %4734 = vrcp.f32 %v3538_v61 }
 0x7b8   : > { %v4735_v63 = vpop.eup %4734 }
 0x7b9   : > { %v3542_v1 = vmul.f32 %v4735_v63, %v3525_v52 }
 0x7bb   : > { %v3549_v3 = vmul.f32 %v4116_v62, %v3542_v1 }
 0x7bd   : > { %v3558_v4 = vadd.f32 %v4118_v2, %v3549_v3 }
 0x7bf   : > { %4736 = vtanh.f32 %v3558_v4 }
 0x7cc   : > { %v4737_v7 = vpop.eup %4736 }
 0x7cd   : > { %4215 = vmatmul.mubr.msk.f32.vlgmr.msra.gmra.mxu0 %vm3323_vm1, %v4737_v7 }
 0x88d   : > { %v3640_v13 = vpop.f32.mrf.mxu0 }
 0x88e   : > { %v3641_v10 = vadd.f32 %v4119_v5, %v3640_v13 }
 0x88f   : > { %v4216_v14 = vpop.f32.mrf.mxu0 }
 0x890   : > { %4738 = vtanh.f32 %v3641_v10 }
 0x89d   : > { %v4739_v16 = vpop.eup %4738 }
 0x89e   : > { %3645 = vst [vmem:[%s461_s15] sm:$0xff] %v4739_v16 }
 0x89f   : > { %4805 = shalt.err (!%p4802_p3)
}
 0x8a0   : > { %s4806_s30 = scalar_lea.hbm %s5314_s17, 128  ;;  %s4810_s24 = scalar_lea.hbm %s5362_s13, 256 }
 0x8a1   : > { %p4807_p2 = scmp.ne.s32.totalorder %s5314_s17, %s4806_s30  ;;  %p4811_p6 = scmp.lt.s32.totalorder %s5314_s17, %s5362_s13 }
 0x8a2   : > { %p4812_p9 = scmp.lt.s32.totalorder %s4810_s24, %s4806_s30 }
 0x8a3   : > { %p4808_p4 = pnand %p4807_p2, %p4980_p5 }
 0x8a4   : > { %p4813_p10 = por %p4812_p9, %p4811_p6 }
 0x8a5   : > { %p4809_p13 = pneg %p4808_p4 }
 0x8a7   : > { %p4814_p12 = pnand %p4813_p10, %p4809_p13 }
 0x8a9   : > { %4817 = shalt.err (!%p4814_p12)
}
 0x8aa   : > { %4225 = dma.vmem_to_hbm [thread:$0]  (%p4980_p5), %s3661_s25, 128, %s5314_s17, %s3647_s19  }
 0x8ab PF: > { %s5382_s14 = sld [smem:[#allocation11_spill]]  ;;  %p4242_p7 = scmp.ge.s32.totalorder %s4860_s28, 2 }
 0x8ac   : > { %s5383_s20 = sld [smem:[#allocation15_spill]] }
 0x8b1   : > { %s3672_s22 = sand.u32 1, %s5382_s14  }
 0x8b2   : > { %p5384_p8 = scmp.ne.s32.totalorder %s5383_s20, 0  ;;  %s3673_s23 = scalar_lea.sflag [#allocation4], %s3672_s22 }
 0x8b4   : > { %p4235_p11 = pnand %p4242_p7, %p5384_p8 }
 0x8b6   : > { %p4236_p0 = pneg %p4235_p11 }
 0x8b8   : > { %4843 = dma.done.wait (%p4236_p0), %s3673_s23, 128  }
 0x8b9   : > { %4845 = vsyncadd (%p4236_p0), %s3673_s23, 4294967168  ;;  %s5385_s28 = sld [smem:[#allocation13_spill]]  ;;  %s5388_s25 = smov %s4852_s26 }
 0x8ba   : > { %s5386_s29 = sld [smem:[#allocation12_spill]] }
 0x8bb   : > { %s5387_s27 = sld [smem:[#allocation14_spill]] }
 0x8bf   : > { %p25_p1 = scmp.ge.s32.totalorder %s5385_s28, 4  }
 0x8c0   : > { %s5389_s26 = smov %s5386_s29 }
 0x8c1   :  { %27 = sbr.rel (!%p25_p1) target bundleno = 5 (0x5), region = 120 }
 0x8c6   :  { %3678 = vsyncpa [#allocation3], 1 }
 0x8c7   :  { %3680 = vsyncpa [#allocation3 + $0x1], 1 }
 0x8c8   :  { %3681 = vsyncpa [#allocation6], 1 }
 0x8c9   :  { %3682 = vsyncpa [#allocation4], 1 }
 0x8ca   :  { %3684 = vsyncpa [#allocation4 + $0x1], 1 }

</bundles_post_ra>
